<compile_context>
chip_gen: v6e
topology: v6e:2x2x1
jax: 0.10.0
libtpu: 0.0.40
codegen_flags: <defaults>
</compile_context>

<pallas_src>
import functools
import math

import jax
import jax.numpy as jnp
from jax.experimental import pallas as pl
from jax.experimental.pallas import tpu as pltpu

# ----------------------------- small BERT config -----------------------------
VOCAB = 128
MAX_POS = 16
HIDDEN = 32
HEADS = 4
HEAD_DIM = HIDDEN // HEADS
LAYERS = 2
INTERMEDIATE = 64
BATCH = 2
SEQ = 8
LN_EPS = 1e-12  # BERT default


# ------------------------------ fused encoder kernel -------------------------
def _layer_norm(x, g, b):
    mu = jnp.mean(x, axis=-1, keepdims=True)
    var = jnp.mean((x - mu) * (x - mu), axis=-1, keepdims=True)
    return (x - mu) * jax.lax.rsqrt(var + LN_EPS) * g + b


def _gelu(x):
    # exact GELU (matches torch.nn.GELU default used inside BERT)
    return 0.5 * x * (1.0 + jax.lax.erf(x * (1.0 / math.sqrt(2.0))))


def _encoder_kernel(emb_ref, emb_g_ref, emb_b_ref,
                    wqkv_ref, bqkv_ref, wo_ref, bo_ref,
                    ln1_g_ref, ln1_b_ref,
                    w1_ref, b1_ref, w2_ref, b2_ref,
                    ln2_g_ref, ln2_b_ref,
                    o_ref, *, batch, seq):
    """Whole BERT encoder in one launch; h and all intermediates live in VMEM."""
    # Embedding LayerNorm (no residual — the zero residual of the old version
    # is gone).
    h = _layer_norm(emb_ref[...], emb_g_ref[...], emb_b_ref[...])  # (B*S, H)

    for l in range(LAYERS):  # static unroll, LAYERS == 2
        # ----- fused QKV projection; 1/sqrt(head_dim) pre-folded into wq/bq ---
        qkv = jnp.dot(h, wqkv_ref[l],
                      preferred_element_type=jnp.float32) + bqkv_ref[l]
        qkv3 = qkv.reshape(batch, seq, 3 * HIDDEN)                 # (B, S, 3H)

        wo_l = wo_ref[l]                                           # (H, H)
        attn_out = jnp.zeros((batch * seq, HIDDEN), jnp.float32)

        # ----- all heads, batched over B with 3-D einsums, all in VMEM -------
        for hd in range(HEADS):
            lo = hd * HEAD_DIM
            q = qkv3[:, :, lo:lo + HEAD_DIM]                       # (B, S, D)
            k = qkv3[:, :, HIDDEN + lo:HIDDEN + lo + HEAD_DIM]
            v = qkv3[:, :, 2 * HIDDEN + lo:2 * HIDDEN + lo + HEAD_DIM]

            s = jnp.einsum('bqd,bkd->bqk', q, k,
                           preferred_element_type=jnp.float32)     # (B, S, S)
            m = jnp.max(s, axis=-1, keepdims=True)
            p = jnp.exp(s - m)
            denom = jnp.sum(p, axis=-1, keepdims=True)
            ctx = jnp.einsum('bqk,bkd->bqd', p, v,
                             preferred_element_type=jnp.float32)   # (B, S, D)
            ctx = ctx * pl.reciprocal(denom, approx=True)

            # Output projection accumulated per head:
            #   concat_h(ctx_h) @ wo == sum_h ctx_h @ wo[h*D:(h+1)*D, :]
            ctx2 = ctx.reshape(batch * seq, HEAD_DIM)
            attn_out = attn_out + jnp.dot(
                ctx2, wo_l[lo:lo + HEAD_DIM, :],
                preferred_element_type=jnp.float32)

        attn_out = attn_out + bo_ref[l]
        h = _layer_norm(attn_out + h, ln1_g_ref[l], ln1_b_ref[l])

        # ----- feed-forward -------------------------------------------------
        ffn = _gelu(jnp.dot(h, w1_ref[l],
                            preferred_element_type=jnp.float32) + b1_ref[l])
        ffn = jnp.dot(ffn, w2_ref[l],
                      preferred_element_type=jnp.float32) + b2_ref[l]
        h = _layer_norm(ffn + h, ln2_g_ref[l], ln2_b_ref[l])

    # CLS token (sequence position 0 of every batch); only this (B, H) slab
    # ever leaves VMEM.
    o_ref[...] = h.reshape(batch, seq, HIDDEN)[:, 0, :]


def bert_encoder_cls(emb, packed, batch, seq):
    """Run the fused encoder; emb: (B*S, HIDDEN) f32 -> (B, HIDDEN) CLS."""
    kernel = functools.partial(_encoder_kernel, batch=batch, seq=seq)
    return pl.pallas_call(
        kernel,
        out_shape=jax.ShapeDtypeStruct((batch, HIDDEN), jnp.float32),
    )(emb,
      packed["emb_ln_g"], packed["emb_ln_b"],
      packed["wqkv"], packed["bqkv"], packed["wo"], packed["bo"],
      packed["ln1_g"], packed["ln1_b"],
      packed["w1"], packed["b1"], packed["w2"], packed["b2"],
      packed["ln2_g"], packed["ln2_b"])


# ------------------------------ parameter init --------------------------------
def init_params(key):
    def dense(k, fan_in, fan_out):
        kw, _ = jax.random.split(k)
        return (0.02 * jax.random.normal(kw, (fan_in, fan_out), jnp.float32),
                jnp.zeros((fan_out,), jnp.float32))

    keys = jax.random.split(key, 4 + LAYERS)
    params = {
        "word_emb": 0.02 * jax.random.normal(keys[0], (VOCAB, HIDDEN), jnp.float32),
        "pos_emb": 0.02 * jax.random.normal(keys[1], (MAX_POS, HIDDEN), jnp.float32),
        "type_emb": 0.02 * jax.random.normal(keys[2], (2, HIDDEN), jnp.float32),
        "emb_ln_g": jnp.ones((HIDDEN,), jnp.float32),
        "emb_ln_b": jnp.zeros((HIDDEN,), jnp.float32),
        "layers": [],
    }
    for l in range(LAYERS):
        lk = jax.random.split(keys[4 + l], 6)
        wq, bq = dense(lk[0], HIDDEN, HIDDEN)
        wk, bk = dense(lk[1], HIDDEN, HIDDEN)
        wv, bv = dense(lk[2], HIDDEN, HIDDEN)
        wo, bo = dense(lk[3], HIDDEN, HIDDEN)
        w1, b1 = dense(lk[4], HIDDEN, INTERMEDIATE)
        w2, b2 = dense(lk[5], INTERMEDIATE, HIDDEN)
        params["layers"].append({
            "wq": wq, "bq": bq, "wk": wk, "bk": bk, "wv": wv, "bv": bv,
            "wo": wo, "bo": bo,
            "ln1_g": jnp.ones((HIDDEN,), jnp.float32),
            "ln1_b": jnp.zeros((HIDDEN,), jnp.float32),
            "w1": w1, "b1": b1, "w2": w2, "b2": b2,
            "ln2_g": jnp.ones((HIDDEN,), jnp.float32),
            "ln2_b": jnp.zeros((HIDDEN,), jnp.float32),
        })
    return params


def pack_params(params):
    """Pack per-layer weights into stacked arrays for the single fused kernel.

    Folds the 1/sqrt(head_dim) attention scale into wq/bq and fuses wq|wk|wv
    into one (HIDDEN, 3*HIDDEN) matrix per layer.  Done once, outside jit.
    """
    scale = 1.0 / math.sqrt(HEAD_DIM)
    wqkv, bqkv, wo, bo = [], [], [], []
    ln1_g, ln1_b, w1, b1 = [], [], [], []
    w2, b2, ln2_g, ln2_b = [], [], [], []
    for layer in params["layers"]:
        wqkv.append(jnp.concatenate(
            [layer["wq"] * scale, layer["wk"], layer["wv"]], axis=1))
        bqkv.append(jnp.concatenate(
            [layer["bq"] * scale, layer["bk"], layer["bv"]], axis=0))
        wo.append(layer["wo"]); bo.append(layer["bo"])
        ln1_g.append(layer["ln1_g"]); ln1_b.append(layer["ln1_b"])
        w1.append(layer["w1"]); b1.append(layer["b1"])
        w2.append(layer["w2"]); b2.append(layer["b2"])
        ln2_g.append(layer["ln2_g"]); ln2_b.append(layer["ln2_b"])

    def stack_vec(xs, n):  # (LAYERS, 1, n): broadcasts against (B*S, n) rows
        return jnp.stack(xs).reshape(LAYERS, 1, n)

    return {
        "word_emb": params["word_emb"],
        "pos_emb": params["pos_emb"],
        "type_emb": params["type_emb"],
        "emb_ln_g": params["emb_ln_g"].reshape(1, HIDDEN),
        "emb_ln_b": params["emb_ln_b"].reshape(1, HIDDEN),
        "wqkv": jnp.stack(wqkv),                       # (L, H, 3H)
        "bqkv": stack_vec(bqkv, 3 * HIDDEN),           # (L, 1, 3H)
        "wo": jnp.stack(wo), "bo": stack_vec(bo, HIDDEN),
        "ln1_g": stack_vec(ln1_g, HIDDEN), "ln1_b": stack_vec(ln1_b, HIDDEN),
        "w1": jnp.stack(w1), "b1": stack_vec(b1, INTERMEDIATE),
        "w2": jnp.stack(w2), "b2": stack_vec(b2, HIDDEN),
        "ln2_g": stack_vec(ln2_g, HIDDEN), "ln2_b": stack_vec(ln2_b, HIDDEN),
    }


# --------------------------------- forward ------------------------------------
def recipe_embedding_forward(packed, token_ids):
    """BERT encoder forward; returns last_hidden_state[:, 0, :]."""
    B, S = token_ids.shape
    assert S <= MAX_POS, "sequence length exceeds positional table"
    # Embedding gather (word + position + token-type) stays in plain JAX.
    word = jnp.take(packed["word_emb"], token_ids, axis=0)          # (B,S,H)
    pos = packed["pos_emb"][:S][None, :, :]                         # (1,S,H)
    ttype = packed["type_emb"][0][None, None, :]                    # (1,1,H)
    emb = (word + pos + ttype).reshape(B * S, HIDDEN)
    return bert_encoder_cls(emb, packed, B, S)                      # (B,H) CLS


# ----------------------------------- main --------------------------------------
if __name__ == "__main__":
    key = jax.random.PRNGKey(0)
    pkey, tkey = jax.random.split(key)
    params = init_params(pkey)
    packed = pack_params(params)
    # synthetic "tokenized recipe text": (BATCH, SEQ) int32 ids
    token_ids = jax.random.randint(tkey, (BATCH, SEQ), 0, VOCAB, dtype=jnp.int32)

    fwd = jax.jit(recipe_embedding_forward)
    out = fwd(packed, token_ids)
    jax.block_until_ready(out)
    assert out.shape == (BATCH, HIDDEN) and out.dtype == jnp.float32
    print("KERNEL_OK")
</pallas_src>

<mosaic_0001>
module attributes {stable_mosaic.version = 11 : i64} {
  func.func @_encoder_kernel(%arg0: memref<16x32xf32, #tpu.memory_space<vmem>>, %arg1: memref<1x32xf32, #tpu.memory_space<vmem>>, %arg2: memref<1x32xf32, #tpu.memory_space<vmem>>, %arg3: memref<2x32x96xf32, #tpu.memory_space<vmem>>, %arg4: memref<2x1x96xf32, #tpu.memory_space<vmem>>, %arg5: memref<2x32x32xf32, #tpu.memory_space<vmem>>, %arg6: memref<2x1x32xf32, #tpu.memory_space<vmem>>, %arg7: memref<2x1x32xf32, #tpu.memory_space<vmem>>, %arg8: memref<2x1x32xf32, #tpu.memory_space<vmem>>, %arg9: memref<2x32x64xf32, #tpu.memory_space<vmem>>, %arg10: memref<2x1x64xf32, #tpu.memory_space<vmem>>, %arg11: memref<2x64x32xf32, #tpu.memory_space<vmem>>, %arg12: memref<2x1x32xf32, #tpu.memory_space<vmem>>, %arg13: memref<2x1x32xf32, #tpu.memory_space<vmem>>, %arg14: memref<2x1x32xf32, #tpu.memory_space<vmem>>, %arg15: memref<2x32xf32, #tpu.memory_space<vmem>>) attributes {dimension_semantics = [], scalar_prefetch = 0 : i64, scratch_operands = 0 : i64, tpu.core_type = #tpu.core_type<tc>} {
    %c0 = arith.constant 0 : index
    %c0_0 = arith.constant 0 : index
    %0 = vector.load %arg0[%c0, %c0_0] : memref<16x32xf32, #tpu.memory_space<vmem>>, vector<16x32xf32>
    %c0_1 = arith.constant 0 : index
    %c0_2 = arith.constant 0 : index
    %1 = vector.load %arg1[%c0_1, %c0_2] : memref<1x32xf32, #tpu.memory_space<vmem>>, vector<1x32xf32>
    %c0_3 = arith.constant 0 : index
    %c0_4 = arith.constant 0 : index
    %2 = vector.load %arg2[%c0_3, %c0_4] : memref<1x32xf32, #tpu.memory_space<vmem>>, vector<1x32xf32>
    %cst = arith.constant dense<0.000000e+00> : vector<16xf32>
    %3 = vector.multi_reduction <add>, %0, %cst [1] : vector<16x32xf32> to vector<16xf32>
    %4 = vector.shape_cast %3 : vector<16xf32> to vector<16x1xf32>
    %cst_5 = arith.constant 3.200000e+01 : f32
    %5 = vector.broadcast %cst_5 : f32 to vector<16x1xf32>
    %6 = arith.divf %4, %5 : vector<16x1xf32>
    %7 = vector.broadcast %6 : vector<16x1xf32> to vector<16x32xf32>
    %8 = arith.subf %0, %7 : vector<16x32xf32>
    %9 = vector.broadcast %6 : vector<16x1xf32> to vector<16x32xf32>
    %10 = arith.subf %0, %9 : vector<16x32xf32>
    %11 = arith.mulf %8, %10 : vector<16x32xf32>
    %cst_6 = arith.constant dense<0.000000e+00> : vector<16xf32>
    %12 = vector.multi_reduction <add>, %11, %cst_6 [1] : vector<16x32xf32> to vector<16xf32>
    %13 = vector.shape_cast %12 : vector<16xf32> to vector<16x1xf32>
    %cst_7 = arith.constant 3.200000e+01 : f32
    %14 = vector.broadcast %cst_7 : f32 to vector<16x1xf32>
    %15 = arith.divf %13, %14 : vector<16x1xf32>
    %16 = vector.broadcast %6 : vector<16x1xf32> to vector<16x32xf32>
    %17 = arith.subf %0, %16 : vector<16x32xf32>
    %cst_8 = arith.constant 9.99999996E-13 : f32
    %18 = vector.broadcast %cst_8 : f32 to vector<16x1xf32>
    %19 = arith.addf %15, %18 : vector<16x1xf32>
    %20 = math.rsqrt %19 : vector<16x1xf32>
    %21 = vector.broadcast %20 : vector<16x1xf32> to vector<16x32xf32>
    %22 = arith.mulf %17, %21 : vector<16x32xf32>
    %23 = vector.broadcast %1 : vector<1x32xf32> to vector<16x32xf32>
    %24 = arith.mulf %22, %23 : vector<16x32xf32>
    %25 = vector.broadcast %2 : vector<1x32xf32> to vector<16x32xf32>
    %26 = arith.addf %24, %25 : vector<16x32xf32>
    %c0_9 = arith.constant 0 : index
    %c0_10 = arith.constant 0 : index
    %c0_11 = arith.constant 0 : index
    %27 = vector.load %arg3[%c0_9, %c0_10, %c0_11] : memref<2x32x96xf32, #tpu.memory_space<vmem>>, vector<1x32x96xf32>
    %28 = vector.shape_cast %27 : vector<1x32x96xf32> to vector<32x96xf32>
    %cst_12 = arith.constant dense<0.000000e+00> : vector<16x96xf32>
    %29 = tpu.matmul %26, %28, %cst_12 {dimension_numbers = #tpu.dot_dimension_numbers<[1], [0], [0], [1], [0, 0, 1, 1], [], []>} : vector<16x32xf32>, vector<32x96xf32>, vector<16x96xf32> -> vector<16x96xf32>
    %c0_13 = arith.constant 0 : index
    %c0_14 = arith.constant 0 : index
    %c0_15 = arith.constant 0 : index
    %30 = vector.load %arg4[%c0_13, %c0_14, %c0_15] : memref<2x1x96xf32, #tpu.memory_space<vmem>>, vector<1x1x96xf32>
    %31 = vector.shape_cast %30 : vector<1x1x96xf32> to vector<1x96xf32>
    %32 = vector.broadcast %31 : vector<1x96xf32> to vector<16x96xf32>
    %33 = arith.addf %29, %32 : vector<16x96xf32>
    %34 = vector.shape_cast %33 : vector<16x96xf32> to vector<2x8x96xf32>
    %c0_16 = arith.constant 0 : index
    %c0_17 = arith.constant 0 : index
    %c0_18 = arith.constant 0 : index
    %35 = vector.load %arg5[%c0_16, %c0_17, %c0_18] : memref<2x32x32xf32, #tpu.memory_space<vmem>>, vector<1x32x32xf32>
    %36 = vector.shape_cast %35 : vector<1x32x32xf32> to vector<32x32xf32>
    %cst_19 = arith.constant 0.000000e+00 : f32
    %37 = vector.broadcast %cst_19 : f32 to vector<16x32xf32>
    %38 = vector.extract_strided_slice %34 {offsets = [0, 0, 0], sizes = [2, 8, 8], strides = [1, 1, 1]} : vector<2x8x96xf32> to vector<2x8x8xf32>
    %39 = vector.extract_strided_slice %34 {offsets = [0, 0, 32], sizes = [2, 8, 8], strides = [1, 1, 1]} : vector<2x8x96xf32> to vector<2x8x8xf32>
    %40 = vector.extract_strided_slice %34 {offsets = [0, 0, 64], sizes = [2, 8, 8], strides = [1, 1, 1]} : vector<2x8x96xf32> to vector<2x8x8xf32>
    "tpu.trace_start"() <{level = 10 : i32, message = "bqd,bkd->bqk"}> : () -> ()
    %cst_20 = arith.constant dense<0.000000e+00> : vector<2x8x8xf32>
    %41 = tpu.matmul %38, %39, %cst_20 {dimension_numbers = #tpu.dot_dimension_numbers<[2], [2], [1], [1], [0, 0, 0, 1, 1, 1], [0], [0]>} : vector<2x8x8xf32>, vector<2x8x8xf32>, vector<2x8x8xf32> -> vector<2x8x8xf32>
    "tpu.trace_stop"() : () -> ()
    %cst_21 = arith.constant dense<0xFF800000> : vector<2x8xf32>
    %42 = vector.multi_reduction <maximumf>, %41, %cst_21 [2] : vector<2x8x8xf32> to vector<2x8xf32>
    %43 = vector.shape_cast %42 : vector<2x8xf32> to vector<2x8x1xf32>
    %44 = vector.broadcast %43 : vector<2x8x1xf32> to vector<2x8x8xf32>
    %45 = arith.subf %41, %44 : vector<2x8x8xf32>
    %46 = math.exp %45 : vector<2x8x8xf32>
    %cst_22 = arith.constant dense<0.000000e+00> : vector<2x8xf32>
    %47 = vector.multi_reduction <add>, %46, %cst_22 [2] : vector<2x8x8xf32> to vector<2x8xf32>
    %48 = vector.shape_cast %47 : vector<2x8xf32> to vector<2x8x1xf32>
    "tpu.trace_start"() <{level = 10 : i32, message = "bqk,bkd->bqd"}> : () -> ()
    %cst_23 = arith.constant dense<0.000000e+00> : vector<2x8x8xf32>
    %49 = tpu.matmul %46, %40, %cst_23 {dimension_numbers = #tpu.dot_dimension_numbers<[2], [1], [1], [2], [0, 0, 0, 1, 1, 2], [0], [0]>} : vector<2x8x8xf32>, vector<2x8x8xf32>, vector<2x8x8xf32> -> vector<2x8x8xf32>
    "tpu.trace_stop"() : () -> ()
    %50 = tpu.reciprocal %48 {approx = true} : vector<2x8x1xf32> -> vector<2x8x1xf32>
    %51 = vector.broadcast %50 : vector<2x8x1xf32> to vector<2x8x8xf32>
    %52 = arith.mulf %49, %51 : vector<2x8x8xf32>
    %53 = vector.shape_cast %52 : vector<2x8x8xf32> to vector<16x8xf32>
    %54 = vector.extract_strided_slice %36 {offsets = [0, 0], sizes = [8, 32], strides = [1, 1]} : vector<32x32xf32> to vector<8x32xf32>
    %cst_24 = arith.constant dense<0.000000e+00> : vector<16x32xf32>
    %55 = tpu.matmul %53, %54, %cst_24 {dimension_numbers = #tpu.dot_dimension_numbers<[1], [0], [0], [1], [0, 0, 1, 1], [], []>} : vector<16x8xf32>, vector<8x32xf32>, vector<16x32xf32> -> vector<16x32xf32>
    %56 = arith.addf %37, %55 : vector<16x32xf32>
    %57 = vector.extract_strided_slice %34 {offsets = [0, 0, 8], sizes = [2, 8, 8], strides = [1, 1, 1]} : vector<2x8x96xf32> to vector<2x8x8xf32>
    %58 = vector.extract_strided_slice %34 {offsets = [0, 0, 40], sizes = [2, 8, 8], strides = [1, 1, 1]} : vector<2x8x96xf32> to vector<2x8x8xf32>
    %59 = vector.extract_strided_slice %34 {offsets = [0, 0, 72], sizes = [2, 8, 8], strides = [1, 1, 1]} : vector<2x8x96xf32> to vector<2x8x8xf32>
    "tpu.trace_start"() <{level = 10 : i32, message = "bqd,bkd->bqk"}> : () -> ()
    %cst_25 = arith.constant dense<0.000000e+00> : vector<2x8x8xf32>
    %60 = tpu.matmul %57, %58, %cst_25 {dimension_numbers = #tpu.dot_dimension_numbers<[2], [2], [1], [1], [0, 0, 0, 1, 1, 1], [0], [0]>} : vector<2x8x8xf32>, vector<2x8x8xf32>, vector<2x8x8xf32> -> vector<2x8x8xf32>
    "tpu.trace_stop"() : () -> ()
    %cst_26 = arith.constant dense<0xFF800000> : vector<2x8xf32>
    %61 = vector.multi_reduction <maximumf>, %60, %cst_26 [2] : vector<2x8x8xf32> to vector<2x8xf32>
    %62 = vector.shape_cast %61 : vector<2x8xf32> to vector<2x8x1xf32>
    %63 = vector.broadcast %62 : vector<2x8x1xf32> to vector<2x8x8xf32>
    %64 = arith.subf %60, %63 : vector<2x8x8xf32>
    %65 = math.exp %64 : vector<2x8x8xf32>
    %cst_27 = arith.constant dense<0.000000e+00> : vector<2x8xf32>
    %66 = vector.multi_reduction <add>, %65, %cst_27 [2] : vector<2x8x8xf32> to vector<2x8xf32>
    %67 = vector.shape_cast %66 : vector<2x8xf32> to vector<2x8x1xf32>
    "tpu.trace_start"() <{level = 10 : i32, message = "bqk,bkd->bqd"}> : () -> ()
    %cst_28 = arith.constant dense<0.000000e+00> : vector<2x8x8xf32>
    %68 = tpu.matmul %65, %59, %cst_28 {dimension_numbers = #tpu.dot_dimension_numbers<[2], [1], [1], [2], [0, 0, 0, 1, 1, 2], [0], [0]>} : vector<2x8x8xf32>, vector<2x8x8xf32>, vector<2x8x8xf32> -> vector<2x8x8xf32>
    "tpu.trace_stop"() : () -> ()
    %69 = tpu.reciprocal %67 {approx = true} : vector<2x8x1xf32> -> vector<2x8x1xf32>
    %70 = vector.broadcast %69 : vector<2x8x1xf32> to vector<2x8x8xf32>
    %71 = arith.mulf %68, %70 : vector<2x8x8xf32>
    %72 = vector.shape_cast %71 : vector<2x8x8xf32> to vector<16x8xf32>
    %73 = vector.extract_strided_slice %36 {offsets = [8, 0], sizes = [8, 32], strides = [1, 1]} : vector<32x32xf32> to vector<8x32xf32>
    %cst_29 = arith.constant dense<0.000000e+00> : vector<16x32xf32>
    %74 = tpu.matmul %72, %73, %cst_29 {dimension_numbers = #tpu.dot_dimension_numbers<[1], [0], [0], [1], [0, 0, 1, 1], [], []>} : vector<16x8xf32>, vector<8x32xf32>, vector<16x32xf32> -> vector<16x32xf32>
    %75 = arith.addf %56, %74 : vector<16x32xf32>
    %76 = vector.extract_strided_slice %34 {offsets = [0, 0, 16], sizes = [2, 8, 8], strides = [1, 1, 1]} : vector<2x8x96xf32> to vector<2x8x8xf32>
    %77 = vector.extract_strided_slice %34 {offsets = [0, 0, 48], sizes = [2, 8, 8], strides = [1, 1, 1]} : vector<2x8x96xf32> to vector<2x8x8xf32>
    %78 = vector.extract_strided_slice %34 {offsets = [0, 0, 80], sizes = [2, 8, 8], strides = [1, 1, 1]} : vector<2x8x96xf32> to vector<2x8x8xf32>
    "tpu.trace_start"() <{level = 10 : i32, message = "bqd,bkd->bqk"}> : () -> ()
    %cst_30 = arith.constant dense<0.000000e+00> : vector<2x8x8xf32>
    %79 = tpu.matmul %76, %77, %cst_30 {dimension_numbers = #tpu.dot_dimension_numbers<[2], [2], [1], [1], [0, 0, 0, 1, 1, 1], [0], [0]>} : vector<2x8x8xf32>, vector<2x8x8xf32>, vector<2x8x8xf32> -> vector<2x8x8xf32>
    "tpu.trace_stop"() : () -> ()
    %cst_31 = arith.constant dense<0xFF800000> : vector<2x8xf32>
    %80 = vector.multi_reduction <maximumf>, %79, %cst_31 [2] : vector<2x8x8xf32> to vector<2x8xf32>
    %81 = vector.shape_cast %80 : vector<2x8xf32> to vector<2x8x1xf32>
    %82 = vector.broadcast %81 : vector<2x8x1xf32> to vector<2x8x8xf32>
    %83 = arith.subf %79, %82 : vector<2x8x8xf32>
    %84 = math.exp %83 : vector<2x8x8xf32>
    %cst_32 = arith.constant dense<0.000000e+00> : vector<2x8xf32>
    %85 = vector.multi_reduction <add>, %84, %cst_32 [2] : vector<2x8x8xf32> to vector<2x8xf32>
    %86 = vector.shape_cast %85 : vector<2x8xf32> to vector<2x8x1xf32>
    "tpu.trace_start"() <{level = 10 : i32, message = "bqk,bkd->bqd"}> : () -> ()
    %cst_33 = arith.constant dense<0.000000e+00> : vector<2x8x8xf32>
    %87 = tpu.matmul %84, %78, %cst_33 {dimension_numbers = #tpu.dot_dimension_numbers<[2], [1], [1], [2], [0, 0, 0, 1, 1, 2], [0], [0]>} : vector<2x8x8xf32>, vector<2x8x8xf32>, vector<2x8x8xf32> -> vector<2x8x8xf32>
    "tpu.trace_stop"() : () -> ()
    %88 = tpu.reciprocal %86 {approx = true} : vector<2x8x1xf32> -> vector<2x8x1xf32>
    %89 = vector.broadcast %88 : vector<2x8x1xf32> to vector<2x8x8xf32>
    %90 = arith.mulf %87, %89 : vector<2x8x8xf32>
    %91 = vector.shape_cast %90 : vector<2x8x8xf32> to vector<16x8xf32>
    %92 = vector.extract_strided_slice %36 {offsets = [16, 0], sizes = [8, 32], strides = [1, 1]} : vector<32x32xf32> to vector<8x32xf32>
    %cst_34 = arith.constant dense<0.000000e+00> : vector<16x32xf32>
    %93 = tpu.matmul %91, %92, %cst_34 {dimension_numbers = #tpu.dot_dimension_numbers<[1], [0], [0], [1], [0, 0, 1, 1], [], []>} : vector<16x8xf32>, vector<8x32xf32>, vector<16x32xf32> -> vector<16x32xf32>
    %94 = arith.addf %75, %93 : vector<16x32xf32>
    %95 = vector.extract_strided_slice %34 {offsets = [0, 0, 24], sizes = [2, 8, 8], strides = [1, 1, 1]} : vector<2x8x96xf32> to vector<2x8x8xf32>
    %96 = vector.extract_strided_slice %34 {offsets = [0, 0, 56], sizes = [2, 8, 8], strides = [1, 1, 1]} : vector<2x8x96xf32> to vector<2x8x8xf32>
    %97 = vector.extract_strided_slice %34 {offsets = [0, 0, 88], sizes = [2, 8, 8], strides = [1, 1, 1]} : vector<2x8x96xf32> to vector<2x8x8xf32>
    "tpu.trace_start"() <{level = 10 : i32, message = "bqd,bkd->bqk"}> : () -> ()
    %cst_35 = arith.constant dense<0.000000e+00> : vector<2x8x8xf32>
    %98 = tpu.matmul %95, %96, %cst_35 {dimension_numbers = #tpu.dot_dimension_numbers<[2], [2], [1], [1], [0, 0, 0, 1, 1, 1], [0], [0]>} : vector<2x8x8xf32>, vector<2x8x8xf32>, vector<2x8x8xf32> -> vector<2x8x8xf32>
    "tpu.trace_stop"() : () -> ()
    %cst_36 = arith.constant dense<0xFF800000> : vector<2x8xf32>
    %99 = vector.multi_reduction <maximumf>, %98, %cst_36 [2] : vector<2x8x8xf32> to vector<2x8xf32>
    %100 = vector.shape_cast %99 : vector<2x8xf32> to vector<2x8x1xf32>
    %101 = vector.broadcast %100 : vector<2x8x1xf32> to vector<2x8x8xf32>
    %102 = arith.subf %98, %101 : vector<2x8x8xf32>
    %103 = math.exp %102 : vector<2x8x8xf32>
    %cst_37 = arith.constant dense<0.000000e+00> : vector<2x8xf32>
    %104 = vector.multi_reduction <add>, %103, %cst_37 [2] : vector<2x8x8xf32> to vector<2x8xf32>
    %105 = vector.shape_cast %104 : vector<2x8xf32> to vector<2x8x1xf32>
    "tpu.trace_start"() <{level = 10 : i32, message = "bqk,bkd->bqd"}> : () -> ()
    %cst_38 = arith.constant dense<0.000000e+00> : vector<2x8x8xf32>
    %106 = tpu.matmul %103, %97, %cst_38 {dimension_numbers = #tpu.dot_dimension_numbers<[2], [1], [1], [2], [0, 0, 0, 1, 1, 2], [0], [0]>} : vector<2x8x8xf32>, vector<2x8x8xf32>, vector<2x8x8xf32> -> vector<2x8x8xf32>
    "tpu.trace_stop"() : () -> ()
    %107 = tpu.reciprocal %105 {approx = true} : vector<2x8x1xf32> -> vector<2x8x1xf32>
    %108 = vector.broadcast %107 : vector<2x8x1xf32> to vector<2x8x8xf32>
    %109 = arith.mulf %106, %108 : vector<2x8x8xf32>
    %110 = vector.shape_cast %109 : vector<2x8x8xf32> to vector<16x8xf32>
    %111 = vector.extract_strided_slice %36 {offsets = [24, 0], sizes = [8, 32], strides = [1, 1]} : vector<32x32xf32> to vector<8x32xf32>
    %cst_39 = arith.constant dense<0.000000e+00> : vector<16x32xf32>
    %112 = tpu.matmul %110, %111, %cst_39 {dimension_numbers = #tpu.dot_dimension_numbers<[1], [0], [0], [1], [0, 0, 1, 1], [], []>} : vector<16x8xf32>, vector<8x32xf32>, vector<16x32xf32> -> vector<16x32xf32>
    %113 = arith.addf %94, %112 : vector<16x32xf32>
    %c0_40 = arith.constant 0 : index
    %c0_41 = arith.constant 0 : index
    %c0_42 = arith.constant 0 : index
    %114 = vector.load %arg6[%c0_40, %c0_41, %c0_42] : memref<2x1x32xf32, #tpu.memory_space<vmem>>, vector<1x1x32xf32>
    %115 = vector.shape_cast %114 : vector<1x1x32xf32> to vector<1x32xf32>
    %116 = vector.broadcast %115 : vector<1x32xf32> to vector<16x32xf32>
    %117 = arith.addf %113, %116 : vector<16x32xf32>
    %118 = arith.addf %117, %26 : vector<16x32xf32>
    %c0_43 = arith.constant 0 : index
    %c0_44 = arith.constant 0 : index
    %c0_45 = arith.constant 0 : index
    %119 = vector.load %arg7[%c0_43, %c0_44, %c0_45] : memref<2x1x32xf32, #tpu.memory_space<vmem>>, vector<1x1x32xf32>
    %120 = vector.shape_cast %119 : vector<1x1x32xf32> to vector<1x32xf32>
    %c0_46 = arith.constant 0 : index
    %c0_47 = arith.constant 0 : index
    %c0_48 = arith.constant 0 : index
    %121 = vector.load %arg8[%c0_46, %c0_47, %c0_48] : memref<2x1x32xf32, #tpu.memory_space<vmem>>, vector<1x1x32xf32>
    %122 = vector.shape_cast %121 : vector<1x1x32xf32> to vector<1x32xf32>
    %cst_49 = arith.constant dense<0.000000e+00> : vector<16xf32>
    %123 = vector.multi_reduction <add>, %118, %cst_49 [1] : vector<16x32xf32> to vector<16xf32>
    %124 = vector.shape_cast %123 : vector<16xf32> to vector<16x1xf32>
    %cst_50 = arith.constant 3.200000e+01 : f32
    %125 = vector.broadcast %cst_50 : f32 to vector<16x1xf32>
    %126 = arith.divf %124, %125 : vector<16x1xf32>
    %127 = vector.broadcast %126 : vector<16x1xf32> to vector<16x32xf32>
    %128 = arith.subf %118, %127 : vector<16x32xf32>
    %129 = vector.broadcast %126 : vector<16x1xf32> to vector<16x32xf32>
    %130 = arith.subf %118, %129 : vector<16x32xf32>
    %131 = arith.mulf %128, %130 : vector<16x32xf32>
    %cst_51 = arith.constant dense<0.000000e+00> : vector<16xf32>
    %132 = vector.multi_reduction <add>, %131, %cst_51 [1] : vector<16x32xf32> to vector<16xf32>
    %133 = vector.shape_cast %132 : vector<16xf32> to vector<16x1xf32>
    %cst_52 = arith.constant 3.200000e+01 : f32
    %134 = vector.broadcast %cst_52 : f32 to vector<16x1xf32>
    %135 = arith.divf %133, %134 : vector<16x1xf32>
    %136 = vector.broadcast %126 : vector<16x1xf32> to vector<16x32xf32>
    %137 = arith.subf %118, %136 : vector<16x32xf32>
    %cst_53 = arith.constant 9.99999996E-13 : f32
    %138 = vector.broadcast %cst_53 : f32 to vector<16x1xf32>
    %139 = arith.addf %135, %138 : vector<16x1xf32>
    %140 = math.rsqrt %139 : vector<16x1xf32>
    %141 = vector.broadcast %140 : vector<16x1xf32> to vector<16x32xf32>
    %142 = arith.mulf %137, %141 : vector<16x32xf32>
    %143 = vector.broadcast %120 : vector<1x32xf32> to vector<16x32xf32>
    %144 = arith.mulf %142, %143 : vector<16x32xf32>
    %145 = vector.broadcast %122 : vector<1x32xf32> to vector<16x32xf32>
    %146 = arith.addf %144, %145 : vector<16x32xf32>
    %c0_54 = arith.constant 0 : index
    %c0_55 = arith.constant 0 : index
    %c0_56 = arith.constant 0 : index
    %147 = vector.load %arg9[%c0_54, %c0_55, %c0_56] : memref<2x32x64xf32, #tpu.memory_space<vmem>>, vector<1x32x64xf32>
    %148 = vector.shape_cast %147 : vector<1x32x64xf32> to vector<32x64xf32>
    %cst_57 = arith.constant dense<0.000000e+00> : vector<16x64xf32>
    %149 = tpu.matmul %146, %148, %cst_57 {dimension_numbers = #tpu.dot_dimension_numbers<[1], [0], [0], [1], [0, 0, 1, 1], [], []>} : vector<16x32xf32>, vector<32x64xf32>, vector<16x64xf32> -> vector<16x64xf32>
    %c0_58 = arith.constant 0 : index
    %c0_59 = arith.constant 0 : index
    %c0_60 = arith.constant 0 : index
    %150 = vector.load %arg10[%c0_58, %c0_59, %c0_60] : memref<2x1x64xf32, #tpu.memory_space<vmem>>, vector<1x1x64xf32>
    %151 = vector.shape_cast %150 : vector<1x1x64xf32> to vector<1x64xf32>
    %152 = vector.broadcast %151 : vector<1x64xf32> to vector<16x64xf32>
    %153 = arith.addf %149, %152 : vector<16x64xf32>
    %cst_61 = arith.constant 5.000000e-01 : f32
    %154 = vector.broadcast %cst_61 : f32 to vector<16x64xf32>
    %155 = arith.mulf %154, %153 : vector<16x64xf32>
    %cst_62 = arith.constant 0.707106769 : f32
    %156 = vector.broadcast %cst_62 : f32 to vector<16x64xf32>
    %157 = arith.mulf %153, %156 : vector<16x64xf32>
    %158 = math.erf %157 : vector<16x64xf32>
    %cst_63 = arith.constant 1.000000e+00 : f32
    %159 = vector.broadcast %cst_63 : f32 to vector<16x64xf32>
    %160 = arith.addf %159, %158 : vector<16x64xf32>
    %161 = arith.mulf %155, %160 : vector<16x64xf32>
    %c0_64 = arith.constant 0 : index
    %c0_65 = arith.constant 0 : index
    %c0_66 = arith.constant 0 : index
    %162 = vector.load %arg11[%c0_64, %c0_65, %c0_66] : memref<2x64x32xf32, #tpu.memory_space<vmem>>, vector<1x64x32xf32>
    %163 = vector.shape_cast %162 : vector<1x64x32xf32> to vector<64x32xf32>
    %cst_67 = arith.constant dense<0.000000e+00> : vector<16x32xf32>
    %164 = tpu.matmul %161, %163, %cst_67 {dimension_numbers = #tpu.dot_dimension_numbers<[1], [0], [0], [1], [0, 0, 1, 1], [], []>} : vector<16x64xf32>, vector<64x32xf32>, vector<16x32xf32> -> vector<16x32xf32>
    %c0_68 = arith.constant 0 : index
    %c0_69 = arith.constant 0 : index
    %c0_70 = arith.constant 0 : index
    %165 = vector.load %arg12[%c0_68, %c0_69, %c0_70] : memref<2x1x32xf32, #tpu.memory_space<vmem>>, vector<1x1x32xf32>
    %166 = vector.shape_cast %165 : vector<1x1x32xf32> to vector<1x32xf32>
    %167 = vector.broadcast %166 : vector<1x32xf32> to vector<16x32xf32>
    %168 = arith.addf %164, %167 : vector<16x32xf32>
    %169 = arith.addf %168, %146 : vector<16x32xf32>
    %c0_71 = arith.constant 0 : index
    %c0_72 = arith.constant 0 : index
    %c0_73 = arith.constant 0 : index
    %170 = vector.load %arg13[%c0_71, %c0_72, %c0_73] : memref<2x1x32xf32, #tpu.memory_space<vmem>>, vector<1x1x32xf32>
    %171 = vector.shape_cast %170 : vector<1x1x32xf32> to vector<1x32xf32>
    %c0_74 = arith.constant 0 : index
    %c0_75 = arith.constant 0 : index
    %c0_76 = arith.constant 0 : index
    %172 = vector.load %arg14[%c0_74, %c0_75, %c0_76] : memref<2x1x32xf32, #tpu.memory_space<vmem>>, vector<1x1x32xf32>
    %173 = vector.shape_cast %172 : vector<1x1x32xf32> to vector<1x32xf32>
    %cst_77 = arith.constant dense<0.000000e+00> : vector<16xf32>
    %174 = vector.multi_reduction <add>, %169, %cst_77 [1] : vector<16x32xf32> to vector<16xf32>
    %175 = vector.shape_cast %174 : vector<16xf32> to vector<16x1xf32>
    %cst_78 = arith.constant 3.200000e+01 : f32
    %176 = vector.broadcast %cst_78 : f32 to vector<16x1xf32>
    %177 = arith.divf %175, %176 : vector<16x1xf32>
    %178 = vector.broadcast %177 : vector<16x1xf32> to vector<16x32xf32>
    %179 = arith.subf %169, %178 : vector<16x32xf32>
    %180 = vector.broadcast %177 : vector<16x1xf32> to vector<16x32xf32>
    %181 = arith.subf %169, %180 : vector<16x32xf32>
    %182 = arith.mulf %179, %181 : vector<16x32xf32>
    %cst_79 = arith.constant dense<0.000000e+00> : vector<16xf32>
    %183 = vector.multi_reduction <add>, %182, %cst_79 [1] : vector<16x32xf32> to vector<16xf32>
    %184 = vector.shape_cast %183 : vector<16xf32> to vector<16x1xf32>
    %cst_80 = arith.constant 3.200000e+01 : f32
    %185 = vector.broadcast %cst_80 : f32 to vector<16x1xf32>
    %186 = arith.divf %184, %185 : vector<16x1xf32>
    %187 = vector.broadcast %177 : vector<16x1xf32> to vector<16x32xf32>
    %188 = arith.subf %169, %187 : vector<16x32xf32>
    %cst_81 = arith.constant 9.99999996E-13 : f32
    %189 = vector.broadcast %cst_81 : f32 to vector<16x1xf32>
    %190 = arith.addf %186, %189 : vector<16x1xf32>
    %191 = math.rsqrt %190 : vector<16x1xf32>
    %192 = vector.broadcast %191 : vector<16x1xf32> to vector<16x32xf32>
    %193 = arith.mulf %188, %192 : vector<16x32xf32>
    %194 = vector.broadcast %171 : vector<1x32xf32> to vector<16x32xf32>
    %195 = arith.mulf %193, %194 : vector<16x32xf32>
    %196 = vector.broadcast %173 : vector<1x32xf32> to vector<16x32xf32>
    %197 = arith.addf %195, %196 : vector<16x32xf32>
    %c1 = arith.constant 1 : index
    %c0_82 = arith.constant 0 : index
    %c0_83 = arith.constant 0 : index
    %198 = vector.load %arg3[%c1, %c0_82, %c0_83] : memref<2x32x96xf32, #tpu.memory_space<vmem>>, vector<1x32x96xf32>
    %199 = vector.shape_cast %198 : vector<1x32x96xf32> to vector<32x96xf32>
    %cst_84 = arith.constant dense<0.000000e+00> : vector<16x96xf32>
    %200 = tpu.matmul %197, %199, %cst_84 {dimension_numbers = #tpu.dot_dimension_numbers<[1], [0], [0], [1], [0, 0, 1, 1], [], []>} : vector<16x32xf32>, vector<32x96xf32>, vector<16x96xf32> -> vector<16x96xf32>
    %c1_85 = arith.constant 1 : index
    %c0_86 = arith.constant 0 : index
    %c0_87 = arith.constant 0 : index
    %201 = vector.load %arg4[%c1_85, %c0_86, %c0_87] : memref<2x1x96xf32, #tpu.memory_space<vmem>>, vector<1x1x96xf32>
    %202 = vector.shape_cast %201 : vector<1x1x96xf32> to vector<1x96xf32>
    %203 = vector.broadcast %202 : vector<1x96xf32> to vector<16x96xf32>
    %204 = arith.addf %200, %203 : vector<16x96xf32>
    %205 = vector.shape_cast %204 : vector<16x96xf32> to vector<2x8x96xf32>
    %c1_88 = arith.constant 1 : index
    %c0_89 = arith.constant 0 : index
    %c0_90 = arith.constant 0 : index
    %206 = vector.load %arg5[%c1_88, %c0_89, %c0_90] : memref<2x32x32xf32, #tpu.memory_space<vmem>>, vector<1x32x32xf32>
    %207 = vector.shape_cast %206 : vector<1x32x32xf32> to vector<32x32xf32>
    %cst_91 = arith.constant 0.000000e+00 : f32
    %208 = vector.broadcast %cst_91 : f32 to vector<16x32xf32>
    %209 = vector.extract_strided_slice %205 {offsets = [0, 0, 0], sizes = [2, 8, 8], strides = [1, 1, 1]} : vector<2x8x96xf32> to vector<2x8x8xf32>
    %210 = vector.extract_strided_slice %205 {offsets = [0, 0, 32], sizes = [2, 8, 8], strides = [1, 1, 1]} : vector<2x8x96xf32> to vector<2x8x8xf32>
    %211 = vector.extract_strided_slice %205 {offsets = [0, 0, 64], sizes = [2, 8, 8], strides = [1, 1, 1]} : vector<2x8x96xf32> to vector<2x8x8xf32>
    "tpu.trace_start"() <{level = 10 : i32, message = "bqd,bkd->bqk"}> : () -> ()
    %cst_92 = arith.constant dense<0.000000e+00> : vector<2x8x8xf32>
    %212 = tpu.matmul %209, %210, %cst_92 {dimension_numbers = #tpu.dot_dimension_numbers<[2], [2], [1], [1], [0, 0, 0, 1, 1, 1], [0], [0]>} : vector<2x8x8xf32>, vector<2x8x8xf32>, vector<2x8x8xf32> -> vector<2x8x8xf32>
    "tpu.trace_stop"() : () -> ()
    %cst_93 = arith.constant dense<0xFF800000> : vector<2x8xf32>
    %213 = vector.multi_reduction <maximumf>, %212, %cst_93 [2] : vector<2x8x8xf32> to vector<2x8xf32>
    %214 = vector.shape_cast %213 : vector<2x8xf32> to vector<2x8x1xf32>
    %215 = vector.broadcast %214 : vector<2x8x1xf32> to vector<2x8x8xf32>
    %216 = arith.subf %212, %215 : vector<2x8x8xf32>
    %217 = math.exp %216 : vector<2x8x8xf32>
    %cst_94 = arith.constant dense<0.000000e+00> : vector<2x8xf32>
    %218 = vector.multi_reduction <add>, %217, %cst_94 [2] : vector<2x8x8xf32> to vector<2x8xf32>
    %219 = vector.shape_cast %218 : vector<2x8xf32> to vector<2x8x1xf32>
    "tpu.trace_start"() <{level = 10 : i32, message = "bqk,bkd->bqd"}> : () -> ()
    %cst_95 = arith.constant dense<0.000000e+00> : vector<2x8x8xf32>
    %220 = tpu.matmul %217, %211, %cst_95 {dimension_numbers = #tpu.dot_dimension_numbers<[2], [1], [1], [2], [0, 0, 0, 1, 1, 2], [0], [0]>} : vector<2x8x8xf32>, vector<2x8x8xf32>, vector<2x8x8xf32> -> vector<2x8x8xf32>
    "tpu.trace_stop"() : () -> ()
    %221 = tpu.reciprocal %219 {approx = true} : vector<2x8x1xf32> -> vector<2x8x1xf32>
    %222 = vector.broadcast %221 : vector<2x8x1xf32> to vector<2x8x8xf32>
    %223 = arith.mulf %220, %222 : vector<2x8x8xf32>
    %224 = vector.shape_cast %223 : vector<2x8x8xf32> to vector<16x8xf32>
    %225 = vector.extract_strided_slice %207 {offsets = [0, 0], sizes = [8, 32], strides = [1, 1]} : vector<32x32xf32> to vector<8x32xf32>
    %cst_96 = arith.constant dense<0.000000e+00> : vector<16x32xf32>
    %226 = tpu.matmul %224, %225, %cst_96 {dimension_numbers = #tpu.dot_dimension_numbers<[1], [0], [0], [1], [0, 0, 1, 1], [], []>} : vector<16x8xf32>, vector<8x32xf32>, vector<16x32xf32> -> vector<16x32xf32>
    %227 = arith.addf %208, %226 : vector<16x32xf32>
    %228 = vector.extract_strided_slice %205 {offsets = [0, 0, 8], sizes = [2, 8, 8], strides = [1, 1, 1]} : vector<2x8x96xf32> to vector<2x8x8xf32>
    %229 = vector.extract_strided_slice %205 {offsets = [0, 0, 40], sizes = [2, 8, 8], strides = [1, 1, 1]} : vector<2x8x96xf32> to vector<2x8x8xf32>
    %230 = vector.extract_strided_slice %205 {offsets = [0, 0, 72], sizes = [2, 8, 8], strides = [1, 1, 1]} : vector<2x8x96xf32> to vector<2x8x8xf32>
    "tpu.trace_start"() <{level = 10 : i32, message = "bqd,bkd->bqk"}> : () -> ()
    %cst_97 = arith.constant dense<0.000000e+00> : vector<2x8x8xf32>
    %231 = tpu.matmul %228, %229, %cst_97 {dimension_numbers = #tpu.dot_dimension_numbers<[2], [2], [1], [1], [0, 0, 0, 1, 1, 1], [0], [0]>} : vector<2x8x8xf32>, vector<2x8x8xf32>, vector<2x8x8xf32> -> vector<2x8x8xf32>
    "tpu.trace_stop"() : () -> ()
    %cst_98 = arith.constant dense<0xFF800000> : vector<2x8xf32>
    %232 = vector.multi_reduction <maximumf>, %231, %cst_98 [2] : vector<2x8x8xf32> to vector<2x8xf32>
    %233 = vector.shape_cast %232 : vector<2x8xf32> to vector<2x8x1xf32>
    %234 = vector.broadcast %233 : vector<2x8x1xf32> to vector<2x8x8xf32>
    %235 = arith.subf %231, %234 : vector<2x8x8xf32>
    %236 = math.exp %235 : vector<2x8x8xf32>
    %cst_99 = arith.constant dense<0.000000e+00> : vector<2x8xf32>
    %237 = vector.multi_reduction <add>, %236, %cst_99 [2] : vector<2x8x8xf32> to vector<2x8xf32>
    %238 = vector.shape_cast %237 : vector<2x8xf32> to vector<2x8x1xf32>
    "tpu.trace_start"() <{level = 10 : i32, message = "bqk,bkd->bqd"}> : () -> ()
    %cst_100 = arith.constant dense<0.000000e+00> : vector<2x8x8xf32>
    %239 = tpu.matmul %236, %230, %cst_100 {dimension_numbers = #tpu.dot_dimension_numbers<[2], [1], [1], [2], [0, 0, 0, 1, 1, 2], [0], [0]>} : vector<2x8x8xf32>, vector<2x8x8xf32>, vector<2x8x8xf32> -> vector<2x8x8xf32>
    "tpu.trace_stop"() : () -> ()
    %240 = tpu.reciprocal %238 {approx = true} : vector<2x8x1xf32> -> vector<2x8x1xf32>
    %241 = vector.broadcast %240 : vector<2x8x1xf32> to vector<2x8x8xf32>
    %242 = arith.mulf %239, %241 : vector<2x8x8xf32>
    %243 = vector.shape_cast %242 : vector<2x8x8xf32> to vector<16x8xf32>
    %244 = vector.extract_strided_slice %207 {offsets = [8, 0], sizes = [8, 32], strides = [1, 1]} : vector<32x32xf32> to vector<8x32xf32>
    %cst_101 = arith.constant dense<0.000000e+00> : vector<16x32xf32>
    %245 = tpu.matmul %243, %244, %cst_101 {dimension_numbers = #tpu.dot_dimension_numbers<[1], [0], [0], [1], [0, 0, 1, 1], [], []>} : vector<16x8xf32>, vector<8x32xf32>, vector<16x32xf32> -> vector<16x32xf32>
    %246 = arith.addf %227, %245 : vector<16x32xf32>
    %247 = vector.extract_strided_slice %205 {offsets = [0, 0, 16], sizes = [2, 8, 8], strides = [1, 1, 1]} : vector<2x8x96xf32> to vector<2x8x8xf32>
    %248 = vector.extract_strided_slice %205 {offsets = [0, 0, 48], sizes = [2, 8, 8], strides = [1, 1, 1]} : vector<2x8x96xf32> to vector<2x8x8xf32>
    %249 = vector.extract_strided_slice %205 {offsets = [0, 0, 80], sizes = [2, 8, 8], strides = [1, 1, 1]} : vector<2x8x96xf32> to vector<2x8x8xf32>
    "tpu.trace_start"() <{level = 10 : i32, message = "bqd,bkd->bqk"}> : () -> ()
    %cst_102 = arith.constant dense<0.000000e+00> : vector<2x8x8xf32>
    %250 = tpu.matmul %247, %248, %cst_102 {dimension_numbers = #tpu.dot_dimension_numbers<[2], [2], [1], [1], [0, 0, 0, 1, 1, 1], [0], [0]>} : vector<2x8x8xf32>, vector<2x8x8xf32>, vector<2x8x8xf32> -> vector<2x8x8xf32>
    "tpu.trace_stop"() : () -> ()
    %cst_103 = arith.constant dense<0xFF800000> : vector<2x8xf32>
    %251 = vector.multi_reduction <maximumf>, %250, %cst_103 [2] : vector<2x8x8xf32> to vector<2x8xf32>
    %252 = vector.shape_cast %251 : vector<2x8xf32> to vector<2x8x1xf32>
    %253 = vector.broadcast %252 : vector<2x8x1xf32> to vector<2x8x8xf32>
    %254 = arith.subf %250, %253 : vector<2x8x8xf32>
    %255 = math.exp %254 : vector<2x8x8xf32>
    %cst_104 = arith.constant dense<0.000000e+00> : vector<2x8xf32>
    %256 = vector.multi_reduction <add>, %255, %cst_104 [2] : vector<2x8x8xf32> to vector<2x8xf32>
    %257 = vector.shape_cast %256 : vector<2x8xf32> to vector<2x8x1xf32>
    "tpu.trace_start"() <{level = 10 : i32, message = "bqk,bkd->bqd"}> : () -> ()
    %cst_105 = arith.constant dense<0.000000e+00> : vector<2x8x8xf32>
    %258 = tpu.matmul %255, %249, %cst_105 {dimension_numbers = #tpu.dot_dimension_numbers<[2], [1], [1], [2], [0, 0, 0, 1, 1, 2], [0], [0]>} : vector<2x8x8xf32>, vector<2x8x8xf32>, vector<2x8x8xf32> -> vector<2x8x8xf32>
    "tpu.trace_stop"() : () -> ()
    %259 = tpu.reciprocal %257 {approx = true} : vector<2x8x1xf32> -> vector<2x8x1xf32>
    %260 = vector.broadcast %259 : vector<2x8x1xf32> to vector<2x8x8xf32>
    %261 = arith.mulf %258, %260 : vector<2x8x8xf32>
    %262 = vector.shape_cast %261 : vector<2x8x8xf32> to vector<16x8xf32>
    %263 = vector.extract_strided_slice %207 {offsets = [16, 0], sizes = [8, 32], strides = [1, 1]} : vector<32x32xf32> to vector<8x32xf32>
    %cst_106 = arith.constant dense<0.000000e+00> : vector<16x32xf32>
    %264 = tpu.matmul %262, %263, %cst_106 {dimension_numbers = #tpu.dot_dimension_numbers<[1], [0], [0], [1], [0, 0, 1, 1], [], []>} : vector<16x8xf32>, vector<8x32xf32>, vector<16x32xf32> -> vector<16x32xf32>
    %265 = arith.addf %246, %264 : vector<16x32xf32>
    %266 = vector.extract_strided_slice %205 {offsets = [0, 0, 24], sizes = [2, 8, 8], strides = [1, 1, 1]} : vector<2x8x96xf32> to vector<2x8x8xf32>
    %267 = vector.extract_strided_slice %205 {offsets = [0, 0, 56], sizes = [2, 8, 8], strides = [1, 1, 1]} : vector<2x8x96xf32> to vector<2x8x8xf32>
    %268 = vector.extract_strided_slice %205 {offsets = [0, 0, 88], sizes = [2, 8, 8], strides = [1, 1, 1]} : vector<2x8x96xf32> to vector<2x8x8xf32>
    "tpu.trace_start"() <{level = 10 : i32, message = "bqd,bkd->bqk"}> : () -> ()
    %cst_107 = arith.constant dense<0.000000e+00> : vector<2x8x8xf32>
    %269 = tpu.matmul %266, %267, %cst_107 {dimension_numbers = #tpu.dot_dimension_numbers<[2], [2], [1], [1], [0, 0, 0, 1, 1, 1], [0], [0]>} : vector<2x8x8xf32>, vector<2x8x8xf32>, vector<2x8x8xf32> -> vector<2x8x8xf32>
    "tpu.trace_stop"() : () -> ()
    %cst_108 = arith.constant dense<0xFF800000> : vector<2x8xf32>
    %270 = vector.multi_reduction <maximumf>, %269, %cst_108 [2] : vector<2x8x8xf32> to vector<2x8xf32>
    %271 = vector.shape_cast %270 : vector<2x8xf32> to vector<2x8x1xf32>
    %272 = vector.broadcast %271 : vector<2x8x1xf32> to vector<2x8x8xf32>
    %273 = arith.subf %269, %272 : vector<2x8x8xf32>
    %274 = math.exp %273 : vector<2x8x8xf32>
    %cst_109 = arith.constant dense<0.000000e+00> : vector<2x8xf32>
    %275 = vector.multi_reduction <add>, %274, %cst_109 [2] : vector<2x8x8xf32> to vector<2x8xf32>
    %276 = vector.shape_cast %275 : vector<2x8xf32> to vector<2x8x1xf32>
    "tpu.trace_start"() <{level = 10 : i32, message = "bqk,bkd->bqd"}> : () -> ()
    %cst_110 = arith.constant dense<0.000000e+00> : vector<2x8x8xf32>
    %277 = tpu.matmul %274, %268, %cst_110 {dimension_numbers = #tpu.dot_dimension_numbers<[2], [1], [1], [2], [0, 0, 0, 1, 1, 2], [0], [0]>} : vector<2x8x8xf32>, vector<2x8x8xf32>, vector<2x8x8xf32> -> vector<2x8x8xf32>
    "tpu.trace_stop"() : () -> ()
    %278 = tpu.reciprocal %276 {approx = true} : vector<2x8x1xf32> -> vector<2x8x1xf32>
    %279 = vector.broadcast %278 : vector<2x8x1xf32> to vector<2x8x8xf32>
    %280 = arith.mulf %277, %279 : vector<2x8x8xf32>
    %281 = vector.shape_cast %280 : vector<2x8x8xf32> to vector<16x8xf32>
    %282 = vector.extract_strided_slice %207 {offsets = [24, 0], sizes = [8, 32], strides = [1, 1]} : vector<32x32xf32> to vector<8x32xf32>
    %cst_111 = arith.constant dense<0.000000e+00> : vector<16x32xf32>
    %283 = tpu.matmul %281, %282, %cst_111 {dimension_numbers = #tpu.dot_dimension_numbers<[1], [0], [0], [1], [0, 0, 1, 1], [], []>} : vector<16x8xf32>, vector<8x32xf32>, vector<16x32xf32> -> vector<16x32xf32>
    %284 = arith.addf %265, %283 : vector<16x32xf32>
    %c1_112 = arith.constant 1 : index
    %c0_113 = arith.constant 0 : index
    %c0_114 = arith.constant 0 : index
    %285 = vector.load %arg6[%c1_112, %c0_113, %c0_114] : memref<2x1x32xf32, #tpu.memory_space<vmem>>, vector<1x1x32xf32>
    %286 = vector.shape_cast %285 : vector<1x1x32xf32> to vector<1x32xf32>
    %287 = vector.broadcast %286 : vector<1x32xf32> to vector<16x32xf32>
    %288 = arith.addf %284, %287 : vector<16x32xf32>
    %289 = arith.addf %288, %197 : vector<16x32xf32>
    %c1_115 = arith.constant 1 : index
    %c0_116 = arith.constant 0 : index
    %c0_117 = arith.constant 0 : index
    %290 = vector.load %arg7[%c1_115, %c0_116, %c0_117] : memref<2x1x32xf32, #tpu.memory_space<vmem>>, vector<1x1x32xf32>
    %291 = vector.shape_cast %290 : vector<1x1x32xf32> to vector<1x32xf32>
    %c1_118 = arith.constant 1 : index
    %c0_119 = arith.constant 0 : index
    %c0_120 = arith.constant 0 : index
    %292 = vector.load %arg8[%c1_118, %c0_119, %c0_120] : memref<2x1x32xf32, #tpu.memory_space<vmem>>, vector<1x1x32xf32>
    %293 = vector.shape_cast %292 : vector<1x1x32xf32> to vector<1x32xf32>
    %cst_121 = arith.constant dense<0.000000e+00> : vector<16xf32>
    %294 = vector.multi_reduction <add>, %289, %cst_121 [1] : vector<16x32xf32> to vector<16xf32>
    %295 = vector.shape_cast %294 : vector<16xf32> to vector<16x1xf32>
    %cst_122 = arith.constant 3.200000e+01 : f32
    %296 = vector.broadcast %cst_122 : f32 to vector<16x1xf32>
    %297 = arith.divf %295, %296 : vector<16x1xf32>
    %298 = vector.broadcast %297 : vector<16x1xf32> to vector<16x32xf32>
    %299 = arith.subf %289, %298 : vector<16x32xf32>
    %300 = vector.broadcast %297 : vector<16x1xf32> to vector<16x32xf32>
    %301 = arith.subf %289, %300 : vector<16x32xf32>
    %302 = arith.mulf %299, %301 : vector<16x32xf32>
    %cst_123 = arith.constant dense<0.000000e+00> : vector<16xf32>
    %303 = vector.multi_reduction <add>, %302, %cst_123 [1] : vector<16x32xf32> to vector<16xf32>
    %304 = vector.shape_cast %303 : vector<16xf32> to vector<16x1xf32>
    %cst_124 = arith.constant 3.200000e+01 : f32
    %305 = vector.broadcast %cst_124 : f32 to vector<16x1xf32>
    %306 = arith.divf %304, %305 : vector<16x1xf32>
    %307 = vector.broadcast %297 : vector<16x1xf32> to vector<16x32xf32>
    %308 = arith.subf %289, %307 : vector<16x32xf32>
    %cst_125 = arith.constant 9.99999996E-13 : f32
    %309 = vector.broadcast %cst_125 : f32 to vector<16x1xf32>
    %310 = arith.addf %306, %309 : vector<16x1xf32>
    %311 = math.rsqrt %310 : vector<16x1xf32>
    %312 = vector.broadcast %311 : vector<16x1xf32> to vector<16x32xf32>
    %313 = arith.mulf %308, %312 : vector<16x32xf32>
    %314 = vector.broadcast %291 : vector<1x32xf32> to vector<16x32xf32>
    %315 = arith.mulf %313, %314 : vector<16x32xf32>
    %316 = vector.broadcast %293 : vector<1x32xf32> to vector<16x32xf32>
    %317 = arith.addf %315, %316 : vector<16x32xf32>
    %c1_126 = arith.constant 1 : index
    %c0_127 = arith.constant 0 : index
    %c0_128 = arith.constant 0 : index
    %318 = vector.load %arg9[%c1_126, %c0_127, %c0_128] : memref<2x32x64xf32, #tpu.memory_space<vmem>>, vector<1x32x64xf32>
    %319 = vector.shape_cast %318 : vector<1x32x64xf32> to vector<32x64xf32>
    %cst_129 = arith.constant dense<0.000000e+00> : vector<16x64xf32>
    %320 = tpu.matmul %317, %319, %cst_129 {dimension_numbers = #tpu.dot_dimension_numbers<[1], [0], [0], [1], [0, 0, 1, 1], [], []>} : vector<16x32xf32>, vector<32x64xf32>, vector<16x64xf32> -> vector<16x64xf32>
    %c1_130 = arith.constant 1 : index
    %c0_131 = arith.constant 0 : index
    %c0_132 = arith.constant 0 : index
    %321 = vector.load %arg10[%c1_130, %c0_131, %c0_132] : memref<2x1x64xf32, #tpu.memory_space<vmem>>, vector<1x1x64xf32>
    %322 = vector.shape_cast %321 : vector<1x1x64xf32> to vector<1x64xf32>
    %323 = vector.broadcast %322 : vector<1x64xf32> to vector<16x64xf32>
    %324 = arith.addf %320, %323 : vector<16x64xf32>
    %cst_133 = arith.constant 5.000000e-01 : f32
    %325 = vector.broadcast %cst_133 : f32 to vector<16x64xf32>
    %326 = arith.mulf %325, %324 : vector<16x64xf32>
    %cst_134 = arith.constant 0.707106769 : f32
    %327 = vector.broadcast %cst_134 : f32 to vector<16x64xf32>
    %328 = arith.mulf %324, %327 : vector<16x64xf32>
    %329 = math.erf %328 : vector<16x64xf32>
    %cst_135 = arith.constant 1.000000e+00 : f32
    %330 = vector.broadcast %cst_135 : f32 to vector<16x64xf32>
    %331 = arith.addf %330, %329 : vector<16x64xf32>
    %332 = arith.mulf %326, %331 : vector<16x64xf32>
    %c1_136 = arith.constant 1 : index
    %c0_137 = arith.constant 0 : index
    %c0_138 = arith.constant 0 : index
    %333 = vector.load %arg11[%c1_136, %c0_137, %c0_138] : memref<2x64x32xf32, #tpu.memory_space<vmem>>, vector<1x64x32xf32>
    %334 = vector.shape_cast %333 : vector<1x64x32xf32> to vector<64x32xf32>
    %cst_139 = arith.constant dense<0.000000e+00> : vector<16x32xf32>
    %335 = tpu.matmul %332, %334, %cst_139 {dimension_numbers = #tpu.dot_dimension_numbers<[1], [0], [0], [1], [0, 0, 1, 1], [], []>} : vector<16x64xf32>, vector<64x32xf32>, vector<16x32xf32> -> vector<16x32xf32>
    %c1_140 = arith.constant 1 : index
    %c0_141 = arith.constant 0 : index
    %c0_142 = arith.constant 0 : index
    %336 = vector.load %arg12[%c1_140, %c0_141, %c0_142] : memref<2x1x32xf32, #tpu.memory_space<vmem>>, vector<1x1x32xf32>
    %337 = vector.shape_cast %336 : vector<1x1x32xf32> to vector<1x32xf32>
    %338 = vector.broadcast %337 : vector<1x32xf32> to vector<16x32xf32>
    %339 = arith.addf %335, %338 : vector<16x32xf32>
    %340 = arith.addf %339, %317 : vector<16x32xf32>
    %c1_143 = arith.constant 1 : index
    %c0_144 = arith.constant 0 : index
    %c0_145 = arith.constant 0 : index
    %341 = vector.load %arg13[%c1_143, %c0_144, %c0_145] : memref<2x1x32xf32, #tpu.memory_space<vmem>>, vector<1x1x32xf32>
    %342 = vector.shape_cast %341 : vector<1x1x32xf32> to vector<1x32xf32>
    %c1_146 = arith.constant 1 : index
    %c0_147 = arith.constant 0 : index
    %c0_148 = arith.constant 0 : index
    %343 = vector.load %arg14[%c1_146, %c0_147, %c0_148] : memref<2x1x32xf32, #tpu.memory_space<vmem>>, vector<1x1x32xf32>
    %344 = vector.shape_cast %343 : vector<1x1x32xf32> to vector<1x32xf32>
    %cst_149 = arith.constant dense<0.000000e+00> : vector<16xf32>
    %345 = vector.multi_reduction <add>, %340, %cst_149 [1] : vector<16x32xf32> to vector<16xf32>
    %346 = vector.shape_cast %345 : vector<16xf32> to vector<16x1xf32>
    %cst_150 = arith.constant 3.200000e+01 : f32
    %347 = vector.broadcast %cst_150 : f32 to vector<16x1xf32>
    %348 = arith.divf %346, %347 : vector<16x1xf32>
    %349 = vector.broadcast %348 : vector<16x1xf32> to vector<16x32xf32>
    %350 = arith.subf %340, %349 : vector<16x32xf32>
    %351 = vector.broadcast %348 : vector<16x1xf32> to vector<16x32xf32>
    %352 = arith.subf %340, %351 : vector<16x32xf32>
    %353 = arith.mulf %350, %352 : vector<16x32xf32>
    %cst_151 = arith.constant dense<0.000000e+00> : vector<16xf32>
    %354 = vector.multi_reduction <add>, %353, %cst_151 [1] : vector<16x32xf32> to vector<16xf32>
    %355 = vector.shape_cast %354 : vector<16xf32> to vector<16x1xf32>
    %cst_152 = arith.constant 3.200000e+01 : f32
    %356 = vector.broadcast %cst_152 : f32 to vector<16x1xf32>
    %357 = arith.divf %355, %356 : vector<16x1xf32>
    %358 = vector.broadcast %348 : vector<16x1xf32> to vector<16x32xf32>
    %359 = arith.subf %340, %358 : vector<16x32xf32>
    %cst_153 = arith.constant 9.99999996E-13 : f32
    %360 = vector.broadcast %cst_153 : f32 to vector<16x1xf32>
    %361 = arith.addf %357, %360 : vector<16x1xf32>
    %362 = math.rsqrt %361 : vector<16x1xf32>
    %363 = vector.broadcast %362 : vector<16x1xf32> to vector<16x32xf32>
    %364 = arith.mulf %359, %363 : vector<16x32xf32>
    %365 = vector.broadcast %342 : vector<1x32xf32> to vector<16x32xf32>
    %366 = arith.mulf %364, %365 : vector<16x32xf32>
    %367 = vector.broadcast %344 : vector<1x32xf32> to vector<16x32xf32>
    %368 = arith.addf %366, %367 : vector<16x32xf32>
    %369 = vector.shape_cast %368 : vector<16x32xf32> to vector<2x8x32xf32>
    %370 = vector.extract_strided_slice %369 {offsets = [0, 0, 0], sizes = [2, 1, 32], strides = [1, 1, 1]} : vector<2x8x32xf32> to vector<2x1x32xf32>
    %371 = vector.shape_cast %370 : vector<2x1x32xf32> to vector<2x32xf32>
    %c0_154 = arith.constant 0 : index
    %c0_155 = arith.constant 0 : index
    %372 = vector.load %arg15[%c0_154, %c0_155] : memref<2x32xf32, #tpu.memory_space<vmem>>, vector<2x32xf32>
    tpu.vector_store %arg15[%c0_154, %c0_155], %371 {strides = array<i32>} : memref<2x32xf32, #tpu.memory_space<vmem>>, vector<2x32xf32>,
    return
  }
}

</mosaic_0001>

<bundles_post_ra>
// kernel: recipe_embedding_forward.1
= control target key start
LH: loop header
LB: loop body
LE: loop exit
PB: predicated region body
PF: predicated region fallthrough
CT: control target
= control target key end

     0   :  { %vm55_vm0 = vcmask 261120   ;;  %s5522_s0 = inlined_call_operand.vmem [shape: f32[16,32], index: 0, kind: input, shape index: {}]   ;;  %s5523_s1 = inlined_call_operand.vmem [shape: f32[1,32], index: 1, kind: input, shape index: {}]   ;;  %s5524_s2 = inlined_call_operand.vmem [shape: f32[1,32], index: 2, kind: input, shape index: {}]   ;;  %s5525_s3 = inlined_call_operand.vmem [shape: f32[2,32,96], index: 3, kind: input, shape index: {}]   ;;  %s5526_s4 = inlined_call_operand.vmem [shape: f32[2,1,96], index: 4, kind: input, shape index: {}]   ;;  %s5527_s5 = inlined_call_operand.vmem [shape: f32[2,32,32], index: 5, kind: input, shape index: {}]   ;;  %s5528_s6 = inlined_call_operand.vmem [shape: f32[2,1,32], index: 6, kind: input, shape index: {}]   ;;  %s5529_s7 = inlined_call_operand.vmem [shape: f32[2,1,32], index: 7, kind: input, shape index: {}]   ;;  %s5530_s8 = inlined_call_operand.vmem [shape: f32[2,1,32], index: 8, kind: input, shape index: {}]   ;;  %s5531_s9 = inlined_call_operand.vmem [shape: f32[2,32,64], index: 9, kind: input, shape index: {}]   ;;  %s5532_s10 = inlined_call_operand.vmem [shape: f32[2,1,64], index: 10, kind: input, shape index: {}]   ;;  %s5533_s11 = inlined_call_operand.vmem [shape: f32[2,64,32], index: 11, kind: input, shape index: {}]   ;;  %s5534_s12 = inlined_call_operand.vmem [shape: f32[2,1,32], index: 12, kind: input, shape index: {}]   ;;  %s5535_s13 = inlined_call_operand.vmem [shape: f32[2,1,32], index: 13, kind: input, shape index: {}]   ;;  %s5536_s14 = inlined_call_operand.vmem [shape: f32[2,1,32], index: 14, kind: input, shape index: {}]   ;;  %s5537_s15 = inlined_call_operand.hbm [shape: f32[2,32], index: 15, kind: output, shape index: {}]  }
   0x1   :  { %v51_v0 = vld [vmem:[%s5522_s0] sm:$0xff]  ;;  %v52_v1 = vld [vmem:[%s5522_s0 + $0x8] sm:$0xff] }
   0x2   :  { %20 = vsyncpa [#allocation3], 0  ;;  %v56_v2 = vsel %vm55_vm0, %v51_v0, 0.0  ;;  %v59_v3 = vsel %vm55_vm0, %v52_v1, 0.0  ;;  %v102_v14 = vld [vmem:[%s5525_s3 + $0x18] sm:$0xff]  ;;  %v101_v15 = vld [vmem:[%s5525_s3 + $0x10] sm:$0xff] }
   0x3   :  { %57 = vadd.xlane.f32.xlu0 %v56_v2  ;;  %4471 = vmatprep.subr.mxu0 %v102_v14  ;;  %v100_v16 = vld [vmem:[%s5525_s3 + $0x8] sm:$0xff]  ;;  %v99_v17 = vld [vmem:[%s5525_s3] sm:$0xff]  ;;  %v4881_v34 = vmov 0.0   ;;  %vm4882_vm1 = vmmov 0   ;;  %s4883_s18 = smov 96   ;;  %s4884_s19 = smov 64  }
   0x4   :  { %4472 = vmatpush3.msra.mxu0 %v102_v14  ;;  %v4217_v25 = vld [vmem:[%s5523_s1] ss:$0 sm:$0xff]  ;;  %4487 = vmatprep.subr.mxu1 %v4881_v34  ;;  %s4885_s20 = smov 88   ;;  %vm198_vm2 = vcmask 64512   ;;  %s4886_s21 = smov 120   ;;  %vm2014_vm3 = vcmask 523264  }
   0x5   :  { %4473 = vmatprep.subr.mxu0 %v101_v15  ;;  %v4218_v27 = vld [vmem:[%s5524_s2] ss:$0 sm:$0xff]  ;;  %4489 = vmatprep.mubr.msk.f32.mxu1 %vm4882_vm1, %v4881_v34  ;;  %s4887_s0 = smov 56   ;;  %s4888_s22 = smov 80   ;;  %vm4198_vm4 = vcmask 1041409   ;;  %vm4201_vm5 = vcmask 254976  }
   0x6   :  { %4474 = vmatpush3.msra.mxu0 %v101_v15  ;;  %v4219_v35 = vld [vmem:[%s5526_s4] ss:$0 sm:$0xff]  ;;  %s4889_s23 = smov 112   ;;  %s4890_s28 = smov 48  }
   0x7   :  { %60 = vadd.xlane.f32.xlu0 %v59_v3  ;;  %4475 = vmatprep.subr.mxu0 %v100_v16  ;;  %v191_v15 = vld [vmem:[%s5527_s5] sm:$0xff]  ;;  %s4891_s29 = smov 72   ;;  %s4892_s30 = smov 104  }
   0x8   :  { %4476 = vmatpush3.msra.mxu0 %v100_v16  ;;  %s5538_s1 = smov 40   ;;  %s4894_s17 = smov [#allocation2]  }
   0x9   :  { %4477 = vmatprep.subr.mxu0 %v99_v17  ;;  %s4209_s2 = sshll.u32 %s4894_s17, 4  ;;  %s4210_s2 = int_to_ptr.vmem [resolvable:$true] %s4209_s2 }
   0xa   :  { %4478 = vmatpush3.msra.mxu0 %v99_v17  ;;  %p4864_p1 = scmp.lt.s32.totalorder %s4210_s2, %s4210_s2 }
   0xb   :  { %4482 = vmatprep.subr.mxu0 %v4881_v34 }
  0x8c   :  { %v58_v4 = vpop.xlane.xlu0 %57 }
  0x8d   :  { %v63_v5 = vmul.f32 0.03125, %v58_v4 }
  0x8f   :  { %v65_v6 = vsub.f32 %v51_v0, %v63_v5 }
  0x90   :  { %v61_v7 = vpop.xlane.xlu0 %60 }
  0x91   :  { %v64_v8 = vmul.f32 0.03125, %v61_v7  ;;  %v67_v9 = vmul.f32 %v65_v6, %v65_v6 }
  0x93   :  { %v66_v10 = vsub.f32 %v52_v1, %v64_v8  ;;  %v69_v11 = vsel %vm55_vm0, %v67_v9, 0.0 }
  0x94   :  { %70 = vadd.xlane.f32.xlu1 %v69_v11 }
  0x95   :  { %v68_v12 = vmul.f32 %v66_v10, %v66_v10 }
  0x97   :  { %v72_v13 = vsel %vm55_vm0, %v68_v12, 0.0 }
  0x98   :  { %73 = vadd.xlane.f32.xlu1 %v72_v13 }
 0x11d   :  { %v71_v18 = vpop.xlane.xlu1 %70 }
 0x11e   :  { %v75_v19 = vmul.f32 0.03125, %v71_v18 }
 0x120   :  { %v77_v20 = vadd.f32 1e-12, %v75_v19 }
 0x121   :  { %v74_v21 = vpop.xlane.xlu1 %73 }
 0x122   :  { %4767 = vrsqrt.f32 %v77_v20  ;;  %v76_v22 = vmul.f32 0.03125, %v74_v21 }
 0x124   :  { %v78_v23 = vadd.f32 1e-12, %v76_v22 }
 0x126   :  { %4769 = vrsqrt.f32 %v78_v23 }
 0x12f   :  { %v4768_v24 = vpop.eup %4767 }
 0x130   :  { %v81_v26 = vmul.f32 %v4768_v24, %v65_v6 }
 0x132   :  { %v89_v28 = vmul.f32 %v4217_v25, %v81_v26 }
 0x133   :  { %v4770_v29 = vpop.eup %4769 }
 0x134   :  { %v82_v30 = vmul.f32 %v4770_v29, %v66_v10  ;;  %v5003_v31 = vadd.f32 %v4218_v27, %v89_v28 }
 0x136   :  { %v90_v32 = vmul.f32 %v4217_v25, %v82_v30  ;;  %4479 = vmatprep.mubr.msk.f32.mxu0 %vm55_vm0, %v5003_v31 }
 0x138   :  { %v5007_v33 = vadd.f32 %v4218_v27, %v90_v32 }
 0x13a   :  { %4480 = vmatmul.mubr.msk.f32.vlgmr.msra.gmra.mxu0 %vm55_vm0, %v5007_v33 }
 0x13b   :  { %4484 = vmatprep.mubr.msk.f32.mxu0 %vm4882_vm1, %v4881_v34 }
 0x1fa   :  { %v4481_v36 = vpop.f32.mrf.mxu0 }
 0x1fb   :  { %v5020_v37 = vadd.f32 %v4481_v36, %v4219_v35 }
 0x1fc   :  { %v182_v38 = vpop.f32.mrf.mxu0 }
 0x1fd   :  { %v5022_v39 = vadd.f32 %v4219_v35, %v182_v38  ;;  %274 = vrot.lane.b32.xlu1 %v5020_v37, %s4883_s18  ;;  %v192_v35 = vld [vmem:[%s5527_s5 + $0x8] sm:$0xff] }
 0x1ff   :  { %196 = vrot.lane.b32.xlu0 %v5022_v39, %s4883_s18 }
 0x201   :  { %444 = vrot.lane.b32.xlu1 %v5020_v37, %s4884_s19 }
 0x205   :  { %526 = vrot.lane.b32.xlu1 %v5022_v39, %s4885_s20 }
 0x209   :  { %604 = vrot.lane.b32.xlu1 %v5020_v37, %s4885_s20 }
 0x26f   :  { %v275_v40 = vpop.permute.xlu1 %274 }
 0x270   :  { %4488 = vmatpush3.xpose.msk.msra.mxu1 %vm198_vm2, %v275_v40 }
 0x271   :  { %v197_v41 = vpop.permute.xlu0 %196  ;;  %4497 = vmatprep.subr.mxu1 %v4881_v34 }
 0x272   :  { %4483 = vmatpush3.xpose.msk.msra.mxu0 %vm198_vm2, %v197_v41 }
 0x273   :  { %4490 = vmatmul.mubr.msk.f32.vlgmr.msra.gmra.mxu1 %vm198_vm2, %v5020_v37  ;;  %v445_v42 = vpop.permute.xlu1 %444  ;;  %4492 = vmatprep.subr.mxu0 %v4881_v34 }
 0x274   :  { %4498 = vmatpush3.msra.mxu1 %v445_v42  ;;  %4499 = vmatprep.mubr.msk.f32.mxu1 %vm4882_vm1, %v4881_v34 }
 0x275   :  { %4485 = vmatmul.mubr.msk.f32.vlgmr.msra.gmra.mxu0 %vm198_vm2, %v5022_v39  ;;  %4507 = vmatprep.subr.mxu1 %v4881_v34 }
 0x276   :  { %4494 = vmatprep.mubr.msk.f32.mxu0 %vm4882_vm1, %v4881_v34 }
 0x277   :  { %v527_v49 = vpop.permute.xlu1 %526 }
 0x27b   :  { %v605_v50 = vpop.permute.xlu1 %604 }
 0x333   :  { %v346_v43 = vpop.f32.mrf.mxu1 }
 0x334   :  { %v353_v44 = vsel %vm198_vm2, %v346_v43, -inf }
 0x335   :  { %v4491_v45 = vpop.f32.mrf.mxu1  ;;  %354 = vmax.xlane.f32.xlu0 %v353_v44  ;;  %v269_v46 = vpop.f32.mrf.mxu0 }
 0x336   :  { %v350_v47 = vsel %vm198_vm2, %v269_v46, -inf }
 0x337   :  { %351 = vmax.xlane.f32.xlu1 %v350_v47  ;;  %v4486_v48 = vpop.f32.mrf.mxu0 }
 0x348   :  { %602 = vrot.lane.b32.xlu1 %v5020_v37, %s4886_s21 }
 0x34b   :  { %368 = vrot.lane.b32.xlu0 %v5022_v39, %s4884_s19 }
 0x34f   :  { %524 = vrot.lane.b32.xlu0 %v5022_v39, %s4886_s21 }
 0x3be   :  { %v355_v51 = vpop.xlane.xlu0 %354 }
 0x3bf   :  { %v357_v52 = vsub.f32 %v346_v43, %v355_v51 }
 0x3c0   :  { %v352_v53 = vpop.xlane.xlu1 %351 }
 0x3c1   :  { %v360_v54 = vmul.f32 1.442695, %v357_v52  ;;  %v356_v55 = vsub.f32 %v269_v46, %v352_v53 }
 0x3c2   :  { %v369_v56 = vpop.permute.xlu0 %368 }
 0x3c3   :  { %4771 = vpow2.f32 %v360_v54  ;;  %v358_v57 = vmul.f32 1.442695, %v356_v55  ;;  %4493 = vmatpush3.msra.mxu0 %v369_v56 }
 0x3c4   :  { %4502 = vmatprep.subr.mxu0 %v4881_v34  ;;  %v603_v60 = vpop.permute.xlu1 %602 }
 0x3c5   :  { %4773 = vpow2.f32 %v358_v57 }
 0x3c6   :  { %v525_v61 = vpop.permute.xlu0 %524 }
 0x3d0   :  { %v4772_v58 = vpop.eup %4771 }
 0x3d1   :  { %4500 = vmatmul.mubr.msk.f32.vlgmr.msra.gmra.mxu1 %vm198_vm2, %v4772_v58  ;;  %v365_v9 = vsel %vm198_vm2, %v4772_v58, 0.0 }
 0x3d2   :  { %v4774_v59 = vpop.eup %4773  ;;  %4508 = vmatpush3.xpose.msk.msra.mxu1 %vm198_vm2, %v605_v50  ;;  %4509 = vmatprep.mubr.msk.f32.mxu1 %vm4882_vm1, %v4881_v34 }
 0x3d3   :  { %4495 = vmatmul.mubr.msk.f32.vlgmr.msra.gmra.mxu0 %vm198_vm2, %v4774_v59  ;;  %4517 = vmatprep.subr.mxu1 %v4881_v34  ;;  %v362_v8 = vsel %vm198_vm2, %v4774_v59, 0.0 }
 0x3d4   :  { %4503 = vmatpush3.xpose.msk.msra.mxu0 %vm198_vm2, %v527_v49  ;;  %4504 = vmatprep.mubr.msk.f32.mxu0 %vm4882_vm1, %v4881_v34 }
 0x3d5   :  { %4510 = vmatmul.mubr.msk.f32.vlgmr.msra.gmra.mxu1 %vm198_vm2, %v603_v60  ;;  %4512 = vmatprep.subr.mxu0 %v4881_v34 }
 0x3d6   :  { %4519 = vmatprep.mubr.msk.f32.mxu1 %vm4882_vm1, %v4881_v34 }
 0x3d7   :  { %4505 = vmatmul.mubr.msk.f32.vlgmr.msra.gmra.mxu0 %vm198_vm2, %v525_v61 }
 0x3d8   :  { %4514 = vmatprep.mubr.msk.f32.mxu0 %vm4882_vm1, %v4881_v34 }
 0x491   :  { %v516_v62 = vpop.f32.mrf.mxu1 }
 0x493   :  { %v440_v63 = vpop.f32.mrf.mxu0  ;;  %v4501_v0 = vpop.f32.mrf.mxu1 }
 0x495   :  { %v4496_v1 = vpop.f32.mrf.mxu0  ;;  %v676_v2 = vpop.f32.mrf.mxu1 }
 0x496   :  { %v683_v3 = vsel %vm198_vm2, %v676_v2, -inf }
 0x497   :  { %684 = vmax.xlane.f32.xlu1 %v683_v3  ;;  %v598_v4 = vpop.f32.mrf.mxu0  ;;  %v4511_v5 = vpop.f32.mrf.mxu1 }
 0x498   :  { %v680_v6 = vsel %vm198_vm2, %v598_v4, -inf }
 0x499   :  { %681 = vmax.xlane.f32.xlu0 %v680_v6  ;;  %v4506_v7 = vpop.f32.mrf.mxu0 }
 0x4a8   :  { %774 = vrot.lane.b32.xlu1 %v5020_v37, %s4887_s0 }
 0x4af   :  { %698 = vrot.lane.b32.xlu0 %v5022_v39, %s4887_s0 }
 0x4cc   :  { %363 = vadd.xlane.f32.xlu1 %v362_v8 }
 0x4ce   :  { %366 = vadd.xlane.f32.xlu0 %v365_v9  ;;  %v193_v9 = vld [vmem:[%s5527_s5 + $0x10] sm:$0xff] }
 0x4dd   :  { %1096 = vrot.lane.b32.xlu1 %v5020_v37, %s4888_s22 }
 0x4e1   :  { %1016 = vrot.lane.b32.xlu1 %v5022_v39, %s4889_s23 }
 0x4e5   :  { %1094 = vrot.lane.b32.xlu1 %v5020_v37, %s4889_s23 }
 0x520   :  { %v685_v10 = vpop.xlane.xlu1 %684 }
 0x521   :  { %v687_v11 = vsub.f32 %v676_v2, %v685_v10 }
 0x522   :  { %v682_v12 = vpop.xlane.xlu0 %681 }
 0x523   :  { %v690_v13 = vmul.f32 1.442695, %v687_v11  ;;  %v686_v14 = vsub.f32 %v598_v4, %v682_v12 }
 0x524   :  { %v775_v16 = vpop.permute.xlu1 %774 }
 0x525   :  { %4775 = vpow2.f32 %v690_v13  ;;  %v688_v17 = vmul.f32 1.442695, %v686_v14  ;;  %4518 = vmatpush3.msra.mxu1 %v775_v16 }
 0x526   :  { %v699_v18 = vpop.permute.xlu0 %698  ;;  %4527 = vmatprep.subr.mxu1 %v191_v15 }
 0x527   :  { %4777 = vpow2.f32 %v688_v17  ;;  %4513 = vmatpush3.msra.mxu0 %v699_v18 }
 0x528   :  { %4522 = vmatprep.subr.mxu0 %v192_v35 }
 0x532   :  { %v4776_v19 = vpop.eup %4775 }
 0x533   :  { %4520 = vmatmul.mubr.msk.f32.vlgmr.msra.gmra.mxu1 %vm198_vm2, %v4776_v19  ;;  %v695_v20 = vsel %vm198_vm2, %v4776_v19, 0.0 }
 0x534   :  { %v4778_v21 = vpop.eup %4777  ;;  %696 = vadd.xlane.f32.xlu0 %v695_v20  ;;  %4528 = vmatpush3.msra.mxu1 %v191_v15 }
 0x535   :  { %4515 = vmatmul.mubr.msk.f32.vlgmr.msra.gmra.mxu0 %vm198_vm2, %v4778_v21  ;;  %4537 = vmatprep.subr.mxu1 %v4881_v34  ;;  %v692_v22 = vsel %vm198_vm2, %v4778_v21, 0.0 }
 0x536   :  { %4523 = vmatpush3.msra.mxu0 %v192_v35 }
 0x537   :  { %4532 = vmatprep.subr.mxu0 %v4881_v34 }
 0x538   :  { %693 = vadd.xlane.f32.xlu0 %v692_v22 }
 0x54e   :  { %1018 = vrot.lane.b32.xlu0 %v5022_v39, %s4888_s22 }
 0x555   :  { %v364_v23 = vpop.xlane.xlu1 %363 }
 0x556   :  { %4779 = vrcp.f32 %v364_v23 }
 0x557   :  { %v367_v24 = vpop.xlane.xlu0 %366 }
 0x558   :  { %4781 = vrcp.f32 %v367_v24 }
 0x559   :  { %v1097_v25 = vpop.permute.xlu1 %1096 }
 0x55d   :  { %v1017_v29 = vpop.permute.xlu1 %1016 }
 0x561   :  { %v1095_v32 = vpop.permute.xlu1 %1094 }
 0x563   :  { %v4780_v26 = vpop.eup %4779 }
 0x564   :  { %v522_v27 = vmul.f32 %v4780_v26, %v440_v63 }
 0x565   :  { %v4782_v28 = vpop.eup %4781 }
 0x566   :  { %4529 = vmatprep.mubr.msk.f32.mxu1 %vm198_vm2, %v522_v27  ;;  %v523_v30 = vmul.f32 %v4782_v28, %v516_v62 }
 0x568   :  { %4530 = vmatmul.mubr.msk.f32.vlgmr.msra.gmra.mxu1 %vm198_vm2, %v523_v30 }
 0x569   :  { %4538 = vmatpush3.xpose.msk.msra.mxu1 %vm198_vm2, %v1097_v25  ;;  %4539 = vmatprep.mubr.msk.f32.mxu1 %vm4882_vm1, %v4881_v34 }
 0x56a   :  { %4547 = vmatprep.subr.mxu1 %v4881_v34 }
 0x56c   :  { %4540 = vmatmul.mubr.msk.f32.vlgmr.msra.gmra.mxu1 %vm198_vm2, %v1095_v32 }
 0x56d   :  { %4549 = vmatprep.mubr.msk.f32.mxu1 %vm4882_vm1, %v4881_v34 }
 0x5bd   :  { %v697_v36 = vpop.xlane.xlu0 %696 }
 0x5c1   :  { %v694_v38 = vpop.xlane.xlu0 %693 }
 0x5c2   :  { %4783 = vrcp.f32 %v694_v38 }
 0x5c3   :  { %4785 = vrcp.f32 %v697_v36 }
 0x5c5   :  { %v1019_v48 = vpop.permute.xlu0 %1018 }
 0x5cf   :  { %v4784_v41 = vpop.eup %4783 }
 0x5d0   :  { %v4786_v44 = vpop.eup %4785 }
 0x5f3   :  { %v846_v40 = vpop.f32.mrf.mxu1 }
 0x5f4   :  { %v853_v46 = vmul.f32 %v4786_v44, %v846_v40 }
 0x5f5   :  { %v770_v42 = vpop.f32.mrf.mxu0  ;;  %v4521_v43 = vpop.f32.mrf.mxu1 }
 0x5f6   :  { %v852_v45 = vmul.f32 %v4784_v41, %v770_v42 }
 0x5f7   :  { %v4516_v47 = vpop.f32.mrf.mxu0 }
 0x5f8   :  { %4524 = vmatprep.mubr.msk.f32.mxu0 %vm198_vm2, %v852_v45 }
 0x5f9   :  { %4525 = vmatmul.mubr.msk.f32.vlgmr.msra.gmra.mxu0 %vm198_vm2, %v853_v46 }
 0x5fa   :  { %4533 = vmatpush3.xpose.msk.msra.mxu0 %vm198_vm2, %v1019_v48  ;;  %4534 = vmatprep.mubr.msk.f32.mxu0 %vm4882_vm1, %v4881_v34 }
 0x5fb   :  { %4542 = vmatprep.subr.mxu0 %v4881_v34 }
 0x5fd   :  { %4535 = vmatmul.mubr.msk.f32.vlgmr.msra.gmra.mxu0 %vm198_vm2, %v1017_v29 }
 0x5fe   :  { %4544 = vmatprep.mubr.msk.f32.mxu0 %vm4882_vm1, %v4881_v34 }
 0x628   :  { %v5118_v49 = vpop.f32.mrf.mxu1 }
 0x62a   :  { %v5120_v50 = vpop.f32.mrf.mxu1 }
 0x62c   :  { %v1168_v51 = vpop.f32.mrf.mxu1 }
 0x62d   :  { %v1175_v52 = vsel %vm198_vm2, %v1168_v51, -inf }
 0x62e   :  { %1176 = vmax.xlane.f32.xlu1 %v1175_v52  ;;  %v4541_v53 = vpop.f32.mrf.mxu1 }
 0x63f   :  { %1266 = vrot.lane.b32.xlu1 %v5020_v37, %s4890_s28 }
 0x6b7   :  { %v1177_v54 = vpop.xlane.xlu1 %1176 }
 0x6b8   :  { %v1179_v55 = vsub.f32 %v1168_v51, %v1177_v54 }
 0x6b9   :  { %v5125_v56 = vpop.f32.mrf.mxu0 }
 0x6ba   :  { %v1182_v57 = vmul.f32 1.442695, %v1179_v55  ;;  %v1013_v25 = vadd.f32 %v5118_v49, %v5125_v56  ;;  %v194_v49 = vld [vmem:[%s5527_s5 + $0x18] sm:$0xff] }
 0x6bb   :  { %v1267_v58 = vpop.permute.xlu1 %1266  ;;  %v5127_v59 = vpop.f32.mrf.mxu0 }
 0x6bc   :  { %4787 = vpow2.f32 %v1182_v57  ;;  %4548 = vmatpush3.msra.mxu1 %v1267_v58  ;;  %v1008_v27 = vadd.f32 %v5120_v50, %v5127_v59 }
 0x6bd   :  { %v1090_v60 = vpop.f32.mrf.mxu0  ;;  %4557 = vmatprep.subr.mxu1 %v4881_v34 }
 0x6be   :  { %v1172_v61 = vsel %vm198_vm2, %v1090_v60, -inf }
 0x6bf   :  { %1173 = vmax.xlane.f32.xlu0 %v1172_v61  ;;  %v4536_v62 = vpop.f32.mrf.mxu0 }
 0x6c0   :  { %v4254_v62 = vld [vmem:[%s5528_s6] ss:$0 sm:$0xff] }
 0x6c9   :  { %v4788_v63 = vpop.eup %4787 }
 0x6ca   :  { %4550 = vmatmul.mubr.msk.f32.vlgmr.msra.gmra.mxu1 %vm198_vm2, %v4788_v63  ;;  %v1187_v0 = vsel %vm198_vm2, %v4788_v63, 0.0 }
 0x6cb   :  { %1188 = vadd.xlane.f32.xlu1 %v1187_v0  ;;  %4559 = vmatprep.mubr.msk.f32.mxu1 %vm4882_vm1, %v4881_v34 }
 0x6d5   :  { %1190 = vrot.lane.b32.xlu0 %v5022_v39, %s4890_s28 }
 0x6dc   :  { %1509 = vrot.lane.b32.xlu1 %v5020_v37, %s4891_s29 }
 0x6e0   :  { %1507 = vrot.lane.b32.xlu1 %v5020_v37, %s4892_s30 }
 0x748   :  { %v1174_v1 = vpop.xlane.xlu0 %1173 }
 0x749   :  { %v1178_v2 = vsub.f32 %v1090_v60, %v1174_v1 }
 0x74b   :  { %v1180_v3 = vmul.f32 1.442695, %v1178_v2 }
 0x74c   :  { %v1191_v4 = vpop.permute.xlu0 %1190 }
 0x74d   :  { %4789 = vpow2.f32 %v1180_v3  ;;  %4543 = vmatpush3.msra.mxu0 %v1191_v4 }
 0x74e   :  { %4552 = vmatprep.subr.mxu0 %v193_v9 }
 0x754   :  { %v1189_v13 = vpop.xlane.xlu1 %1188 }
 0x758   :  { %v1510_v17 = vpop.permute.xlu1 %1509 }
 0x75a   :  { %v4790_v5 = vpop.eup %4789 }
 0x75b   :  { %4545 = vmatmul.mubr.msk.f32.vlgmr.msra.gmra.mxu0 %vm198_vm2, %v4790_v5  ;;  %v1184_v6 = vsel %vm198_vm2, %v4790_v5, 0.0 }
 0x75c   :  { %1185 = vadd.xlane.f32.xlu0 %v1184_v6  ;;  %4553 = vmatpush3.msra.mxu0 %v193_v9  ;;  %v1508_v21 = vpop.permute.xlu1 %1507 }
 0x75d   :  { %4562 = vmatprep.subr.mxu0 %v4881_v34 }
 0x772   :  { %1431 = vrot.lane.b32.xlu0 %v5022_v39, %s4891_s29 }
 0x776   :  { %1429 = vrot.lane.b32.xlu0 %v5022_v39, %s4892_s30 }
 0x78a   :  { %v1338_v7 = vpop.f32.mrf.mxu1 }
 0x78c   :  { %v4551_v8 = vpop.f32.mrf.mxu1 }
 0x7e5   :  { %v1186_v10 = vpop.xlane.xlu0 %1185 }
 0x7e6   :  { %4791 = vrcp.f32 %v1186_v10 }
 0x7e7   :  { %4793 = vrcp.f32 %v1189_v13 }
 0x7e9   :  { %v1432_v11 = vpop.permute.xlu0 %1431 }
 0x7ea   :  { %4558 = vmatpush3.xpose.msk.msra.mxu1 %vm198_vm2, %v1432_v11 }
 0x7eb   :  { %4567 = vmatprep.subr.mxu1 %v4881_v34 }
 0x7ed   :  { %v1430_v12 = vpop.permute.xlu0 %1429 }
 0x7ee   :  { %4560 = vmatmul.mubr.msk.f32.vlgmr.msra.gmra.mxu1 %vm198_vm2, %v1430_v12 }
 0x7ef   :  { %4569 = vmatprep.mubr.msk.f32.mxu1 %vm4882_vm1, %v4881_v34 }
 0x7f3   :  { %v4792_v14 = vpop.eup %4791 }
 0x7f4   :  { %v4794_v16 = vpop.eup %4793 }
 0x7f5   :  { %v1345_v19 = vmul.f32 %v4794_v16, %v1338_v7  ;;  %v1899_v16 = vld [vmem:[%s5531_s9 + $0x10] sm:$0xff] }
 0x81b   :  { %v1262_v15 = vpop.f32.mrf.mxu0 }
 0x81c   :  { %v1344_v18 = vmul.f32 %v4792_v14, %v1262_v15 }
 0x81d   :  { %v4546_v20 = vpop.f32.mrf.mxu0 }
 0x81e   :  { %4554 = vmatprep.mubr.msk.f32.mxu0 %vm198_vm2, %v1344_v18  ;;  %v1897_v18 = vld [vmem:[%s5531_s9] sm:$0xff] }
 0x81f   :  { %4555 = vmatmul.mubr.msk.f32.vlgmr.msra.gmra.mxu0 %vm198_vm2, %v1345_v19 }
 0x820   :  { %4563 = vmatpush3.xpose.msk.msra.mxu0 %vm198_vm2, %v1510_v17  ;;  %4564 = vmatprep.mubr.msk.f32.mxu0 %vm4882_vm1, %v4881_v34  ;;  %v1898_v17 = vld [vmem:[%s5531_s9 + $0x8] sm:$0xff] }
 0x821   :  { %4572 = vmatprep.subr.mxu0 %v4881_v34 }
 0x823   :  { %4565 = vmatmul.mubr.msk.f32.vlgmr.msra.gmra.mxu0 %vm198_vm2, %v1508_v21 }
 0x824   :  { %4574 = vmatprep.mubr.msk.f32.mxu0 %vm4882_vm1, %v4881_v34 }
 0x8ae   :  { %v1503_v22 = vpop.f32.mrf.mxu1 }
 0x8af   :  { %v1585_v23 = vsel %vm198_vm2, %v1503_v22, -inf }
 0x8b0   :  { %1586 = vmax.xlane.f32.xlu0 %v1585_v23  ;;  %v4561_v24 = vpop.f32.mrf.mxu1 }
 0x8c6   :  { %1603 = vrot.lane.b32.xlu0 %v5022_v39, %s5538_s1 }
 0x8df   :  { %v4556_v26 = vpop.f32.mrf.mxu0 }
 0x8e0   :  { %v1428_v28 = vadd.f32 %v4556_v26, %v1013_v25  ;;  %v4255_v26 = vld [vmem:[%s5529_s7] ss:$0 sm:$0xff] }
 0x8e1   :  { %v1418_v29 = vpop.f32.mrf.mxu0 }
 0x8e2   :  { %v1427_v30 = vadd.f32 %v1418_v29, %v1008_v27 }
 0x8e3   :  { %v1581_v32 = vpop.f32.mrf.mxu0 }
 0x8e4   :  { %v1588_v35 = vsel %vm198_vm2, %v1581_v32, -inf }
 0x8e5   :  { %1589 = vmax.xlane.f32.xlu1 %v1588_v35  ;;  %v4566_v36 = vpop.f32.mrf.mxu0 }
 0x8f6   :  { %1679 = vrot.lane.b32.xlu1 %v5020_v37, %s5538_s1 }
 0x939   :  { %v1587_v38 = vpop.xlane.xlu0 %1586 }
 0x93a   :  { %v1591_v39 = vsub.f32 %v1503_v22, %v1587_v38 }
 0x93c   :  { %v1593_v40 = vmul.f32 1.442695, %v1591_v39  ;;  %v2006_v39 = vld [vmem:[%s5533_s11 + $0x38] sm:$0xff] }
 0x93d   :  { %v1604_v41 = vpop.permute.xlu0 %1603 }
 0x93e   :  { %4795 = vpow2.f32 %v1593_v40  ;;  %4568 = vmatpush3.msra.mxu1 %v1604_v41  ;;  %v2005_v40 = vld [vmem:[%s5533_s11 + $0x30] sm:$0xff]  ;;  %v2004_v41 = vld [vmem:[%s5533_s11 + $0x28] sm:$0xff] }
 0x93f   :  { %4577 = vmatprep.subr.mxu1 %v194_v49 }
 0x94b   :  { %v4796_v42 = vpop.eup %4795 }
 0x94c   :  { %4570 = vmatmul.mubr.msk.f32.vlgmr.msra.gmra.mxu1 %vm198_vm2, %v4796_v42  ;;  %v1597_v43 = vsel %vm198_vm2, %v4796_v42, 0.0  ;;  %v2003_v42 = vld [vmem:[%s5533_s11 + $0x20] sm:$0xff] }
 0x94d   :  { %1598 = vadd.xlane.f32.xlu0 %v1597_v43  ;;  %4578 = vmatpush3.msra.mxu1 %v194_v49  ;;  %v2002_v43 = vld [vmem:[%s5533_s11 + $0x18] sm:$0xff] }
 0x94e   :  { %4593 = vmatprep.subr.mxu1 %v2006_v39 }
 0x96e   :  { %v1590_v44 = vpop.xlane.xlu1 %1589 }
 0x96f   :  { %v1592_v45 = vsub.f32 %v1581_v32, %v1590_v44  ;;  %v2001_v44 = vld [vmem:[%s5533_s11 + $0x10] sm:$0xff] }
 0x971   :  { %v1595_v46 = vmul.f32 1.442695, %v1592_v45  ;;  %v2000_v45 = vld [vmem:[%s5533_s11 + $0x8] sm:$0xff] }
 0x972   :  { %v1680_v47 = vpop.permute.xlu1 %1679 }
 0x973   :  { %4797 = vpow2.f32 %v1595_v46  ;;  %4573 = vmatpush3.msra.mxu0 %v1680_v47  ;;  %v1999_v46 = vld [vmem:[%s5533_s11] sm:$0xff] }
 0x974   :  { %v4257_v47 = vld [vmem:[%s5532_s10] ss:$0 sm:$0xff] }
 0x980   :  { %v4798_v48 = vpop.eup %4797 }
 0x981   :  { %4575 = vmatmul.mubr.msk.f32.vlgmr.msra.gmra.mxu0 %vm198_vm2, %v4798_v48  ;;  %v1600_v37 = vsel %vm198_vm2, %v4798_v48, 0.0 }
 0x982   :  { %1601 = vadd.xlane.f32.xlu1 %v1600_v37 }
 0x9d6   :  { %v1599_v50 = vpop.xlane.xlu0 %1598 }
 0x9d7   :  { %4799 = vrcp.f32 %v1599_v50 }
 0x9e4   :  { %v4800_v51 = vpop.eup %4799 }
 0xa0b   :  { %v1602_v55 = vpop.xlane.xlu1 %1601 }
 0xa0c   :  { %v1675_v52 = vpop.f32.mrf.mxu1  ;;  %4801 = vrcp.f32 %v1602_v55 }
 0xa0d   :  { %v1757_v53 = vmul.f32 %v4800_v51, %v1675_v52 }
 0xa0e   :  { %v4571_v54 = vpop.f32.mrf.mxu1 }
 0xa0f   :  { %4579 = vmatprep.mubr.msk.f32.mxu1 %vm198_vm2, %v1757_v53 }
 0xa19   :  { %v4802_v56 = vpop.eup %4801 }
 0xa41   :  { %v1751_v57 = vpop.f32.mrf.mxu0 }
 0xa42   :  { %v1758_v58 = vmul.f32 %v4802_v56, %v1751_v57 }
 0xa43   :  { %v4576_v59 = vpop.f32.mrf.mxu0 }
 0xa44   :  { %4580 = vmatmul.mubr.msk.f32.vlgmr.msra.gmra.mxu1 %vm198_vm2, %v1758_v58 }
 0xa45   :  { %4594 = vmatpush3.msra.mxu1 %v2006_v39 }
 0xa46   :  { %4595 = vmatprep.subr.mxu1 %v2005_v40 }
 0xa47   :  { %4596 = vmatpush3.msra.mxu1 %v2005_v40 }
 0xa48   :  { %4597 = vmatprep.subr.mxu1 %v2004_v41 }
 0xa49   :  { %4598 = vmatpush3.msra.mxu1 %v2004_v41 }
 0xa4a   :  { %4599 = vmatprep.subr.mxu1 %v2003_v42 }
 0xa4b   :  { %4600 = vmatpush3.msra.mxu1 %v2003_v42 }
 0xa4c   :  { %4601 = vmatprep.subr.mxu1 %v2002_v43 }
 0xa4d   :  { %4602 = vmatpush3.msra.mxu1 %v2002_v43 }
 0xa4e   :  { %4603 = vmatprep.subr.mxu1 %v2001_v44 }
 0xa4f   :  { %4604 = vmatpush3.msra.mxu1 %v2001_v44 }
 0xa50   :  { %4605 = vmatprep.subr.mxu1 %v2000_v45 }
 0xa51   :  { %4606 = vmatpush3.msra.mxu1 %v2000_v45 }
 0xa52   :  { %4607 = vmatprep.subr.mxu1 %v1999_v46 }
 0xa53   :  { %4608 = vmatpush3.msra.mxu1 %v1999_v46 }
 0xa54   :  { %4628 = vmatprep.subr.mxu1 %v4881_v34 }
 0xb04   :  { %v4581_v60 = vpop.f32.mrf.mxu1 }
 0xb05   :  { %v1841_v61 = vadd.f32 %v4581_v60, %v1428_v28  ;;  %v4256_v28 = vld [vmem:[%s5530_s8] ss:$0 sm:$0xff] }
 0xb06   :  { %v1831_v63 = vpop.f32.mrf.mxu1 }
 0xb07   :  { %v1840_v0 = vadd.f32 %v1831_v63, %v1427_v30  ;;  %v1850_v1 = vadd.f32 %v4254_v62, %v1841_v61  ;;  %v4260_v61 = vld [vmem:[%s5534_s12] ss:$0 sm:$0xff] }
 0xb09   :  { %v1849_v2 = vadd.f32 %v4254_v62, %v1840_v0  ;;  %v1852_v5 = vadd.f32 %v1850_v1, %v5007_v33  ;;  %v1900_v33 = vld [vmem:[%s5531_s9 + $0x18] sm:$0xff] }
 0xb0a   :  { %4582 = vmatprep.subr.mxu0 %v1900_v33 }
 0xb0b   :  { %v1851_v3 = vadd.f32 %v1849_v2, %v5003_v31  ;;  %v1858_v6 = vsel %vm55_vm0, %v1852_v5, 0.0  ;;  %4583 = vmatpush3.msra.mxu0 %v1900_v33  ;;  %v4267_v33 = vld [vmem:[%s5525_s3 + $0x30] sm:$0xff] }
 0xb0c   :  { %4584 = vmatprep.subr.mxu0 %v1899_v16 }
 0xb0d   :  { %v1855_v4 = vsel %vm55_vm0, %v1851_v3, 0.0  ;;  %4585 = vmatpush3.msra.mxu0 %v1899_v16  ;;  %v4266_v16 = vld [vmem:[%s5525_s3 + $0x28] sm:$0xff] }
 0xb0e   :  { %1856 = vadd.xlane.f32.xlu0 %v1855_v4  ;;  %4586 = vmatprep.subr.mxu0 %v1898_v17 }
 0xb0f   :  { %4587 = vmatpush3.msra.mxu0 %v1898_v17  ;;  %v4265_v17 = vld [vmem:[%s5525_s3 + $0x20] sm:$0xff] }
 0xb10   :  { %4588 = vmatprep.subr.mxu0 %v1897_v18 }
 0xb11   :  { %4589 = vmatpush3.msra.mxu0 %v1897_v18 }
 0xb12   :  { %1859 = vadd.xlane.f32.xlu0 %v1858_v6 }
 0xb97   :  { %v1857_v7 = vpop.xlane.xlu0 %1856 }
 0xb98   :  { %v1861_v8 = vmul.f32 0.03125, %v1857_v7 }
 0xb9a   :  { %v1863_v9 = vsub.f32 %v1851_v3, %v1861_v8 }
 0xb9b   :  { %v1860_v10 = vpop.xlane.xlu0 %1859 }
 0xb9c   :  { %v1862_v11 = vmul.f32 0.03125, %v1860_v10  ;;  %v1865_v12 = vmul.f32 %v1863_v9, %v1863_v9 }
 0xb9e   :  { %v1864_v13 = vsub.f32 %v1852_v5, %v1862_v11  ;;  %v1867_v14 = vsel %vm55_vm0, %v1865_v12, 0.0 }
 0xb9f   :  { %1868 = vadd.xlane.f32.xlu0 %v1867_v14 }
 0xba0   :  { %v1866_v15 = vmul.f32 %v1864_v13, %v1864_v13 }
 0xba2   :  { %v1870_v31 = vsel %vm55_vm0, %v1866_v15, 0.0 }
 0xba3   :  { %1871 = vadd.xlane.f32.xlu1 %v1870_v31  ;;  %v4268_v31 = vld [vmem:[%s5525_s3 + $0x38] sm:$0xff] }
 0xba4   :  { %4612 = vmatprep.subr.mxu0 %v4268_v31 }
 0xc28   :  { %v1869_v19 = vpop.xlane.xlu0 %1868 }
 0xc29   :  { %v1873_v20 = vmul.f32 0.03125, %v1869_v19 }
 0xc2b   :  { %v1875_v21 = vadd.f32 1e-12, %v1873_v20 }
 0xc2c   :  { %v1872_v22 = vpop.xlane.xlu1 %1871 }
 0xc2d   :  { %4803 = vrsqrt.f32 %v1875_v21  ;;  %v1874_v23 = vmul.f32 0.03125, %v1872_v22 }
 0xc2f   :  { %v1876_v24 = vadd.f32 1e-12, %v1874_v23 }
 0xc31   :  { %4805 = vrsqrt.f32 %v1876_v24 }
 0xc3a   :  { %v4804_v25 = vpop.eup %4803 }
 0xc3b   :  { %v1879_v27 = vmul.f32 %v4804_v25, %v1863_v9  ;;  %v4263_v25 = vld [vmem:[%s5535_s13] ss:$0 sm:$0xff] }
 0xc3d   :  { %v1887_v29 = vmul.f32 %v4255_v26, %v1879_v27 }
 0xc3e   :  { %v4806_v30 = vpop.eup %4805 }
 0xc3f   :  { %v1880_v32 = vmul.f32 %v4806_v30, %v1864_v13  ;;  %v1895_v35 = vadd.f32 %v4256_v28, %v1887_v29  ;;  %v4264_v30 = vld [vmem:[%s5536_s14] ss:$0 sm:$0xff] }
 0xc41   :  { %v1888_v36 = vmul.f32 %v4255_v26, %v1880_v32  ;;  %4590 = vmatprep.mubr.msk.f32.mxu0 %vm55_vm0, %v1895_v35 }
 0xc43   :  { %v1896_v38 = vadd.f32 %v4256_v28, %v1888_v36 }
 0xc45   :  { %4591 = vmatmul.mubr.msk.f32.vlgmr.msra.gmra.mxu0 %vm55_vm0, %v1896_v38 }
 0xc46   :  { %4613 = vmatpush3.msra.mxu0 %v4268_v31 }
 0xc47   :  { %4614 = vmatprep.subr.mxu0 %v4267_v33 }
 0xc48   :  { %4615 = vmatpush3.msra.mxu0 %v4267_v33  ;;  %v4273_v33 = vld [vmem:[%s5527_s5 + $0x20] sm:$0xff] }
 0xc49   :  { %4616 = vmatprep.subr.mxu0 %v4266_v16 }
 0xc4a   :  { %4617 = vmatpush3.msra.mxu0 %v4266_v16 }
 0xc4b   :  { %4618 = vmatprep.subr.mxu0 %v4265_v17 }
 0xc4c   :  { %4619 = vmatpush3.msra.mxu0 %v4265_v17 }
 0xc4d   :  { %4623 = vmatprep.subr.mxu0 %v4881_v34 }
 0xd05   :  { %v4592_v48 = vpop.f32.mrf.mxu0 }
 0xd06   :  { %v1986_v37 = vadd.f32 %v4592_v48, %v4257_v47 }
 0xd07   :  { %v1980_v49 = vpop.f32.mrf.mxu0 }
 0xd08   :  { %v1992_v50 = vmul.f32 0.70710677, %v1986_v37  ;;  %v1981_v51 = vadd.f32 %v4257_v47, %v1980_v49  ;;  %v1990_v58 = vmul.f32 0.5, %v1986_v37 }
 0xd0a   :  { %4807 = verf.f32 %v1992_v50  ;;  %v1991_v52 = vmul.f32 0.70710677, %v1981_v51  ;;  %v1989_v56 = vmul.f32 0.5, %v1981_v51 }
 0xd0c   :  { %4809 = verf.f32 %v1991_v52 }
 0xd17   :  { %v4808_v53 = vpop.eup %4807 }
 0xd18   :  { %v1996_v55 = vadd.f32 1.0, %v4808_v53 }
 0xd19   :  { %v4810_v54 = vpop.eup %4809 }
 0xd1a   :  { %v1995_v57 = vadd.f32 1.0, %v4810_v54  ;;  %v1998_v60 = vmul.f32 %v1996_v55, %v1990_v58 }
 0xd1c   :  { %v1997_v59 = vmul.f32 %v1995_v57, %v1989_v56 }
 0xd1e   :  { %4609 = vmatprep.mubr.msk.f32.mxu1 %vm2014_vm3, %v1997_v59 }
 0xd1f   :  { %4610 = vmatmul.mubr.msk.f32.vlgmr.msra.gmra.mxu1 %vm2014_vm3, %v1998_v60 }
 0xd20   :  { %4630 = vmatprep.mubr.msk.f32.mxu1 %vm4882_vm1, %v4881_v34 }
 0xddf   :  { %v4611_v62 = vpop.f32.mrf.mxu1 }
 0xde0   :  { %v2093_v63 = vadd.f32 %v4611_v62, %v4260_v61 }
 0xde1   :  { %v2087_v0 = vpop.f32.mrf.mxu1 }
 0xde2   :  { %v2088_v1 = vadd.f32 %v4260_v61, %v2087_v0  ;;  %v2097_v2 = vadd.f32 %v2093_v63, %v1896_v38  ;;  %v4270_v38 = vld [vmem:[%s5526_s4 + $0x1] ss:$0 sm:$0xff] }
 0xde4   :  { %v2103_v3 = vsel %vm55_vm0, %v2097_v2, 0.0  ;;  %v2096_v4 = vadd.f32 %v2088_v1, %v1895_v35 }
 0xde5   :  { %2104 = vadd.xlane.f32.xlu1 %v2103_v3 }
 0xde6   :  { %v2100_v5 = vsel %vm55_vm0, %v2096_v4, 0.0 }
 0xde7   :  { %2101 = vadd.xlane.f32.xlu0 %v2100_v5 }
 0xe6e   :  { %v2105_v6 = vpop.xlane.xlu1 %2104 }
 0xe6f   :  { %v2107_v7 = vmul.f32 0.03125, %v2105_v6 }
 0xe70   :  { %v2102_v8 = vpop.xlane.xlu0 %2101 }
 0xe71   :  { %v2109_v9 = vsub.f32 %v2097_v2, %v2107_v7  ;;  %v2106_v10 = vmul.f32 0.03125, %v2102_v8 }
 0xe73   :  { %v2108_v11 = vsub.f32 %v2096_v4, %v2106_v10  ;;  %v2111_v12 = vmul.f32 %v2109_v9, %v2109_v9 }
 0xe75   :  { %v2115_v13 = vsel %vm55_vm0, %v2111_v12, 0.0  ;;  %v2110_v14 = vmul.f32 %v2108_v11, %v2108_v11 }
 0xe76   :  { %2116 = vadd.xlane.f32.xlu1 %v2115_v13 }
 0xe77   :  { %v2112_v15 = vsel %vm55_vm0, %v2110_v14, 0.0 }
 0xe78   :  { %2113 = vadd.xlane.f32.xlu0 %v2112_v15 }
 0xeff   :  { %v2117_v18 = vpop.xlane.xlu1 %2116 }
 0xf00   :  { %v2119_v19 = vmul.f32 0.03125, %v2117_v18 }
 0xf01   :  { %v2114_v20 = vpop.xlane.xlu0 %2113 }
 0xf02   :  { %v2121_v21 = vadd.f32 1e-12, %v2119_v19  ;;  %v2118_v22 = vmul.f32 0.03125, %v2114_v20 }
 0xf04   :  { %4811 = vrsqrt.f32 %v2121_v21  ;;  %v2120_v23 = vadd.f32 1e-12, %v2118_v22 }
 0xf06   :  { %4813 = vrsqrt.f32 %v2120_v23 }
 0xf11   :  { %v4812_v24 = vpop.eup %4811 }
 0xf12   :  { %v2125_v26 = vmul.f32 %v4812_v24, %v2109_v9 }
 0xf13   :  { %v4814_v27 = vpop.eup %4813 }
 0xf14   :  { %v2124_v28 = vmul.f32 %v4814_v27, %v2108_v11  ;;  %v2133_v29 = vmul.f32 %v4263_v25, %v2125_v26 }
 0xf16   :  { %v2132_v32 = vmul.f32 %v4263_v25, %v2124_v28  ;;  %v5273_v36 = vadd.f32 %v4264_v30, %v2133_v29 }
 0xf18   :  { %v5271_v35 = vadd.f32 %v4264_v30, %v2132_v32 }
 0xf1a   :  { %4620 = vmatprep.mubr.msk.f32.mxu0 %vm55_vm0, %v5271_v35 }
 0xf1b   :  { %4621 = vmatmul.mubr.msk.f32.vlgmr.msra.gmra.mxu0 %vm55_vm0, %v5273_v36 }
 0xf1c   :  { %4625 = vmatprep.mubr.msk.f32.mxu0 %vm4882_vm1, %v4881_v34 }
 0xfdb   :  { %v4622_v39 = vpop.f32.mrf.mxu0 }
 0xfdc   :  { %v5284_v40 = vadd.f32 %v4622_v39, %v4270_v38 }
 0xfdd   :  { %v2227_v41 = vpop.f32.mrf.mxu0 }
 0xfde   :  { %v5286_v42 = vadd.f32 %v4270_v38, %v2227_v41  ;;  %2319 = vrot.lane.b32.xlu1 %v5284_v40, %s4883_s18  ;;  %v4274_v38 = vld [vmem:[%s5527_s5 + $0x28] sm:$0xff] }
 0xfe0   :  { %2242 = vrot.lane.b32.xlu0 %v5286_v42, %s4883_s18 }
 0xfe2   :  { %2489 = vrot.lane.b32.xlu1 %v5284_v40, %s4884_s19 }
 0xfe6   :  { %2571 = vrot.lane.b32.xlu1 %v5286_v42, %s4885_s20 }
 0xfea   :  { %2649 = vrot.lane.b32.xlu1 %v5284_v40, %s4885_s20 }
0x1050   :  { %v2320_v43 = vpop.permute.xlu1 %2319 }
0x1051   :  { %4629 = vmatpush3.xpose.msk.msra.mxu1 %vm198_vm2, %v2320_v43 }
0x1052   :  { %v2243_v44 = vpop.permute.xlu0 %2242  ;;  %4638 = vmatprep.subr.mxu1 %v4881_v34 }
0x1053   :  { %4624 = vmatpush3.xpose.msk.msra.mxu0 %vm198_vm2, %v2243_v44 }
0x1054   :  { %4631 = vmatmul.mubr.msk.f32.vlgmr.msra.gmra.mxu1 %vm198_vm2, %v5284_v40  ;;  %v2490_v45 = vpop.permute.xlu1 %2489  ;;  %4633 = vmatprep.subr.mxu0 %v4881_v34 }
0x1055   :  { %4639 = vmatpush3.msra.mxu1 %v2490_v45  ;;  %4640 = vmatprep.mubr.msk.f32.mxu1 %vm4882_vm1, %v4881_v34 }
0x1056   :  { %4626 = vmatmul.mubr.msk.f32.vlgmr.msra.gmra.mxu0 %vm198_vm2, %v5286_v42  ;;  %4648 = vmatprep.subr.mxu1 %v4881_v34 }
0x1057   :  { %4635 = vmatprep.mubr.msk.f32.mxu0 %vm4882_vm1, %v4881_v34 }
0x1058   :  { %v2572_v51 = vpop.permute.xlu1 %2571 }
0x105c   :  { %v2650_v52 = vpop.permute.xlu1 %2649 }
0x1114   :  { %v2391_v46 = vpop.f32.mrf.mxu1 }
0x1115   :  { %v2398_v47 = vsel %vm198_vm2, %v2391_v46, -inf }
0x1116   :  { %v4632_v48 = vpop.f32.mrf.mxu1  ;;  %2399 = vmax.xlane.f32.xlu0 %v2398_v47  ;;  %v2314_v37 = vpop.f32.mrf.mxu0 }
0x1117   :  { %v2395_v49 = vsel %vm198_vm2, %v2314_v37, -inf }
0x1118   :  { %2396 = vmax.xlane.f32.xlu1 %v2395_v49  ;;  %v4627_v50 = vpop.f32.mrf.mxu0 }
0x1129   :  { %2647 = vrot.lane.b32.xlu1 %v5284_v40, %s4886_s21 }
0x112c   :  { %2413 = vrot.lane.b32.xlu0 %v5286_v42, %s4884_s19 }
0x1130   :  { %2569 = vrot.lane.b32.xlu0 %v5286_v42, %s4886_s21 }
0x119f   :  { %v2400_v53 = vpop.xlane.xlu0 %2399 }
0x11a0   :  { %v2402_v54 = vsub.f32 %v2391_v46, %v2400_v53 }
0x11a1   :  { %v2397_v55 = vpop.xlane.xlu1 %2396 }
0x11a2   :  { %v2405_v56 = vmul.f32 1.442695, %v2402_v54  ;;  %v2401_v57 = vsub.f32 %v2314_v37, %v2397_v55 }
0x11a3   :  { %v2414_v58 = vpop.permute.xlu0 %2413 }
0x11a4   :  { %4815 = vpow2.f32 %v2405_v56  ;;  %v2403_v59 = vmul.f32 1.442695, %v2401_v57  ;;  %4634 = vmatpush3.msra.mxu0 %v2414_v58 }
0x11a5   :  { %4643 = vmatprep.subr.mxu0 %v4881_v34  ;;  %v2648_v62 = vpop.permute.xlu1 %2647 }
0x11a6   :  { %4817 = vpow2.f32 %v2403_v59 }
0x11a7   :  { %v2570_v63 = vpop.permute.xlu0 %2569 }
0x11b1   :  { %v4816_v60 = vpop.eup %4815 }
0x11b2   :  { %4641 = vmatmul.mubr.msk.f32.vlgmr.msra.gmra.mxu1 %vm198_vm2, %v4816_v60  ;;  %v2410_v11 = vsel %vm198_vm2, %v4816_v60, 0.0 }
0x11b3   :  { %v4818_v61 = vpop.eup %4817  ;;  %4649 = vmatpush3.xpose.msk.msra.mxu1 %vm198_vm2, %v2650_v52  ;;  %4650 = vmatprep.mubr.msk.f32.mxu1 %vm4882_vm1, %v4881_v34 }
0x11b4   :  { %4636 = vmatmul.mubr.msk.f32.vlgmr.msra.gmra.mxu0 %vm198_vm2, %v4818_v61  ;;  %4658 = vmatprep.subr.mxu1 %v4881_v34  ;;  %v2407_v10 = vsel %vm198_vm2, %v4818_v61, 0.0 }
0x11b5   :  { %4644 = vmatpush3.xpose.msk.msra.mxu0 %vm198_vm2, %v2572_v51  ;;  %4645 = vmatprep.mubr.msk.f32.mxu0 %vm4882_vm1, %v4881_v34 }
0x11b6   :  { %4651 = vmatmul.mubr.msk.f32.vlgmr.msra.gmra.mxu1 %vm198_vm2, %v2648_v62  ;;  %4653 = vmatprep.subr.mxu0 %v4881_v34 }
0x11b7   :  { %4660 = vmatprep.mubr.msk.f32.mxu1 %vm4882_vm1, %v4881_v34 }
0x11b8   :  { %4646 = vmatmul.mubr.msk.f32.vlgmr.msra.gmra.mxu0 %vm198_vm2, %v2570_v63 }
0x11b9   :  { %4655 = vmatprep.mubr.msk.f32.mxu0 %vm4882_vm1, %v4881_v34 }
0x1272   :  { %v2561_v0 = vpop.f32.mrf.mxu1 }
0x1274   :  { %v2485_v1 = vpop.f32.mrf.mxu0  ;;  %v4642_v2 = vpop.f32.mrf.mxu1 }
0x1276   :  { %v4637_v3 = vpop.f32.mrf.mxu0  ;;  %v2721_v4 = vpop.f32.mrf.mxu1 }
0x1277   :  { %v2728_v5 = vsel %vm198_vm2, %v2721_v4, -inf }
0x1278   :  { %2729 = vmax.xlane.f32.xlu1 %v2728_v5  ;;  %v2643_v6 = vpop.f32.mrf.mxu0  ;;  %v4652_v7 = vpop.f32.mrf.mxu1 }
0x1279   :  { %v2725_v8 = vsel %vm198_vm2, %v2643_v6, -inf }
0x127a   :  { %2726 = vmax.xlane.f32.xlu0 %v2725_v8  ;;  %v4647_v9 = vpop.f32.mrf.mxu0 }
0x1289   :  { %2819 = vrot.lane.b32.xlu1 %v5284_v40, %s4887_s0 }
0x1290   :  { %2743 = vrot.lane.b32.xlu0 %v5286_v42, %s4887_s0 }
0x12ad   :  { %2408 = vadd.xlane.f32.xlu1 %v2407_v10 }
0x12af   :  { %2411 = vadd.xlane.f32.xlu0 %v2410_v11  ;;  %v4275_v11 = vld [vmem:[%s5527_s5 + $0x30] sm:$0xff] }
0x12be   :  { %3141 = vrot.lane.b32.xlu1 %v5284_v40, %s4888_s22 }
0x12c2   :  { %3061 = vrot.lane.b32.xlu1 %v5286_v42, %s4889_s23 }
0x12c6   :  { %3139 = vrot.lane.b32.xlu1 %v5284_v40, %s4889_s23 }
0x1301   :  { %v2730_v12 = vpop.xlane.xlu1 %2729 }
0x1302   :  { %v2732_v13 = vsub.f32 %v2721_v4, %v2730_v12 }
0x1303   :  { %v2727_v14 = vpop.xlane.xlu0 %2726 }
0x1304   :  { %v2735_v15 = vmul.f32 1.442695, %v2732_v13  ;;  %v2731_v31 = vsub.f32 %v2643_v6, %v2727_v14 }
0x1305   :  { %v2820_v16 = vpop.permute.xlu1 %2819 }
0x1306   :  { %4819 = vpow2.f32 %v2735_v15  ;;  %v2733_v17 = vmul.f32 1.442695, %v2731_v31  ;;  %4659 = vmatpush3.msra.mxu1 %v2820_v16 }
0x1307   :  { %v2744_v18 = vpop.permute.xlu0 %2743  ;;  %4668 = vmatprep.subr.mxu1 %v4273_v33 }
0x1308   :  { %4821 = vpow2.f32 %v2733_v17  ;;  %4654 = vmatpush3.msra.mxu0 %v2744_v18 }
0x1309   :  { %4663 = vmatprep.subr.mxu0 %v4274_v38 }
0x1313   :  { %v4820_v19 = vpop.eup %4819 }
0x1314   :  { %4661 = vmatmul.mubr.msk.f32.vlgmr.msra.gmra.mxu1 %vm198_vm2, %v4820_v19  ;;  %v2740_v20 = vsel %vm198_vm2, %v4820_v19, 0.0 }
0x1315   :  { %v4822_v21 = vpop.eup %4821  ;;  %2741 = vadd.xlane.f32.xlu0 %v2740_v20  ;;  %4669 = vmatpush3.msra.mxu1 %v4273_v33 }
0x1316   :  { %4656 = vmatmul.mubr.msk.f32.vlgmr.msra.gmra.mxu0 %vm198_vm2, %v4822_v21  ;;  %4678 = vmatprep.subr.mxu1 %v4881_v34  ;;  %v2737_v22 = vsel %vm198_vm2, %v4822_v21, 0.0 }
0x1317   :  { %4664 = vmatpush3.msra.mxu0 %v4274_v38 }
0x1318   :  { %4673 = vmatprep.subr.mxu0 %v4881_v34 }
0x1319   :  { %2738 = vadd.xlane.f32.xlu0 %v2737_v22 }
0x132f   :  { %3063 = vrot.lane.b32.xlu0 %v5286_v42, %s4888_s22  ;;  %s5540_s22 = smov 40  }
0x1336   :  { %v2409_v23 = vpop.xlane.xlu1 %2408 }
0x1337   :  { %4823 = vrcp.f32 %v2409_v23 }
0x1338   :  { %v2412_v24 = vpop.xlane.xlu0 %2411 }
0x1339   :  { %4825 = vrcp.f32 %v2412_v24 }
0x133a   :  { %v3142_v25 = vpop.permute.xlu1 %3141 }
0x133e   :  { %v3062_v29 = vpop.permute.xlu1 %3061 }
0x1342   :  { %v3140_v32 = vpop.permute.xlu1 %3139 }
0x1344   :  { %v4824_v26 = vpop.eup %4823 }
0x1345   :  { %v2567_v27 = vmul.f32 %v4824_v26, %v2485_v1 }
0x1346   :  { %v4826_v28 = vpop.eup %4825 }
0x1347   :  { %4670 = vmatprep.mubr.msk.f32.mxu1 %vm198_vm2, %v2567_v27  ;;  %v2568_v30 = vmul.f32 %v4826_v28, %v2561_v0 }
0x1349   :  { %4671 = vmatmul.mubr.msk.f32.vlgmr.msra.gmra.mxu1 %vm198_vm2, %v2568_v30 }
0x134a   :  { %4679 = vmatpush3.xpose.msk.msra.mxu1 %vm198_vm2, %v3142_v25  ;;  %4680 = vmatprep.mubr.msk.f32.mxu1 %vm4882_vm1, %v4881_v34 }
0x134b   :  { %4688 = vmatprep.subr.mxu1 %v4881_v34 }
0x134d   :  { %4681 = vmatmul.mubr.msk.f32.vlgmr.msra.gmra.mxu1 %vm198_vm2, %v3140_v32 }
0x134e   :  { %4690 = vmatprep.mubr.msk.f32.mxu1 %vm4882_vm1, %v4881_v34 }
0x139e   :  { %v2742_v39 = vpop.xlane.xlu0 %2741 }
0x13a2   :  { %v2739_v41 = vpop.xlane.xlu0 %2738 }
0x13a3   :  { %4827 = vrcp.f32 %v2739_v41 }
0x13a4   :  { %4829 = vrcp.f32 %v2742_v39 }
0x13a6   :  { %v3064_v50 = vpop.permute.xlu0 %3063 }
0x13b0   :  { %v4828_v44 = vpop.eup %4827 }
0x13b1   :  { %v4830_v47 = vpop.eup %4829 }
0x13d4   :  { %v2891_v43 = vpop.f32.mrf.mxu1 }
0x13d5   :  { %v2898_v37 = vmul.f32 %v4830_v47, %v2891_v43 }
0x13d6   :  { %v2815_v45 = vpop.f32.mrf.mxu0  ;;  %v4662_v46 = vpop.f32.mrf.mxu1 }
0x13d7   :  { %v2897_v48 = vmul.f32 %v4828_v44, %v2815_v45 }
0x13d8   :  { %v4657_v49 = vpop.f32.mrf.mxu0 }
0x13d9   :  { %4665 = vmatprep.mubr.msk.f32.mxu0 %vm198_vm2, %v2897_v48 }
0x13da   :  { %4666 = vmatmul.mubr.msk.f32.vlgmr.msra.gmra.mxu0 %vm198_vm2, %v2898_v37 }
0x13db   :  { %4674 = vmatpush3.xpose.msk.msra.mxu0 %vm198_vm2, %v3064_v50  ;;  %4675 = vmatprep.mubr.msk.f32.mxu0 %vm4882_vm1, %v4881_v34  ;;  %v4276_v50 = vld [vmem:[%s5527_s5 + $0x38] sm:$0xff] }
0x13dc   :  { %4683 = vmatprep.subr.mxu0 %v4881_v34 }
0x13de   :  { %4676 = vmatmul.mubr.msk.f32.vlgmr.msra.gmra.mxu0 %vm198_vm2, %v3062_v29 }
0x13df   :  { %4685 = vmatprep.mubr.msk.f32.mxu0 %vm4882_vm1, %v4881_v34 }
0x1409   :  { %v5382_v51 = vpop.f32.mrf.mxu1 }
0x140b   :  { %v5384_v52 = vpop.f32.mrf.mxu1 }
0x140d   :  { %v3213_v53 = vpop.f32.mrf.mxu1 }
0x140e   :  { %v3220_v54 = vsel %vm198_vm2, %v3213_v53, -inf }
0x140f   :  { %3221 = vmax.xlane.f32.xlu1 %v3220_v54  ;;  %v4682_v55 = vpop.f32.mrf.mxu1 }
0x1420   :  { %3311 = vrot.lane.b32.xlu1 %v5284_v40, %s4890_s28 }
0x1498   :  { %v3222_v56 = vpop.xlane.xlu1 %3221 }
0x1499   :  { %v3224_v57 = vsub.f32 %v3213_v53, %v3222_v56 }
0x149a   :  { %v5389_v58 = vpop.f32.mrf.mxu0 }
0x149b   :  { %v3227_v59 = vmul.f32 1.442695, %v3224_v57  ;;  %v3058_v25 = vadd.f32 %v5382_v51, %v5389_v58 }
0x149c   :  { %v3312_v60 = vpop.permute.xlu1 %3311  ;;  %v5391_v61 = vpop.f32.mrf.mxu0 }
0x149d   :  { %4831 = vpow2.f32 %v3227_v59  ;;  %4689 = vmatpush3.msra.mxu1 %v3312_v60  ;;  %v3053_v27 = vadd.f32 %v5384_v52, %v5391_v61 }
0x149e   :  { %v3135_v62 = vpop.f32.mrf.mxu0  ;;  %4698 = vmatprep.subr.mxu1 %v4881_v34 }
0x149f   :  { %v3217_v63 = vsel %vm198_vm2, %v3135_v62, -inf }
0x14a0   :  { %3218 = vmax.xlane.f32.xlu0 %v3217_v63  ;;  %v4677_v0 = vpop.f32.mrf.mxu0  ;;  %v4310_v63 = vld [vmem:[%s5528_s6 + $0x1] ss:$0 sm:$0xff] }
0x14aa   :  { %v4832_v1 = vpop.eup %4831 }
0x14ab   :  { %4691 = vmatmul.mubr.msk.f32.vlgmr.msra.gmra.mxu1 %vm198_vm2, %v4832_v1  ;;  %v3232_v2 = vsel %vm198_vm2, %v4832_v1, 0.0 }
0x14ac   :  { %3233 = vadd.xlane.f32.xlu1 %v3232_v2  ;;  %4700 = vmatprep.mubr.msk.f32.mxu1 %vm4882_vm1, %v4881_v34 }
0x14b6   :  { %3235 = vrot.lane.b32.xlu0 %v5286_v42, %s4890_s28 }
0x14bd   :  { %3554 = vrot.lane.b32.xlu1 %v5284_v40, %s4891_s29 }
0x14c1   :  { %3552 = vrot.lane.b32.xlu1 %v5284_v40, %s4892_s30 }
0x1529   :  { %v3219_v3 = vpop.xlane.xlu0 %3218 }
0x152a   :  { %v3223_v4 = vsub.f32 %v3135_v62, %v3219_v3 }
0x152c   :  { %v3225_v5 = vmul.f32 1.442695, %v3223_v4 }
0x152d   :  { %v3236_v6 = vpop.permute.xlu0 %3235 }
0x152e   :  { %4833 = vpow2.f32 %v3225_v5  ;;  %4684 = vmatpush3.msra.mxu0 %v3236_v6 }
0x152f   :  { %4693 = vmatprep.subr.mxu0 %v4275_v11 }
0x1535   :  { %v3234_v15 = vpop.xlane.xlu1 %3233 }
0x1539   :  { %v3555_v17 = vpop.permute.xlu1 %3554 }
0x153b   :  { %v4834_v7 = vpop.eup %4833 }
0x153c   :  { %4686 = vmatmul.mubr.msk.f32.vlgmr.msra.gmra.mxu0 %vm198_vm2, %v4834_v7  ;;  %v3229_v8 = vsel %vm198_vm2, %v4834_v7, 0.0 }
0x153d   :  { %3230 = vadd.xlane.f32.xlu0 %v3229_v8  ;;  %4694 = vmatpush3.msra.mxu0 %v4275_v11  ;;  %v3553_v21 = vpop.permute.xlu1 %3552 }
0x153e   :  { %4703 = vmatprep.subr.mxu0 %v4881_v34 }
0x1553   :  { %3476 = vrot.lane.b32.xlu0 %v5286_v42, %s4891_s29 }
0x1557   :  { %3474 = vrot.lane.b32.xlu0 %v5286_v42, %s4892_s30 }
0x156b   :  { %v3383_v9 = vpop.f32.mrf.mxu1 }
0x156d   :  { %v4692_v10 = vpop.f32.mrf.mxu1 }
0x15c6   :  { %v3231_v12 = vpop.xlane.xlu0 %3230 }
0x15c7   :  { %4835 = vrcp.f32 %v3231_v12 }
0x15c8   :  { %4837 = vrcp.f32 %v3234_v15 }
0x15ca   :  { %v3477_v13 = vpop.permute.xlu0 %3476 }
0x15cb   :  { %4699 = vmatpush3.xpose.msk.msra.mxu1 %vm198_vm2, %v3477_v13 }
0x15cc   :  { %4708 = vmatprep.subr.mxu1 %v4881_v34 }
0x15ce   :  { %v3475_v14 = vpop.permute.xlu0 %3474 }
0x15cf   :  { %4701 = vmatmul.mubr.msk.f32.vlgmr.msra.gmra.mxu1 %vm198_vm2, %v3475_v14 }
0x15d0   :  { %4710 = vmatprep.mubr.msk.f32.mxu1 %vm4882_vm1, %v4881_v34 }
0x15d4   :  { %v4836_v31 = vpop.eup %4835 }
0x15d5   :  { %v4838_v16 = vpop.eup %4837 }
0x15d6   :  { %v3390_v19 = vmul.f32 %v4838_v16, %v3383_v9  ;;  %v4316_v16 = vld [vmem:[%s5531_s9 + $0x28] sm:$0xff] }
0x15fc   :  { %v3307_v33 = vpop.f32.mrf.mxu0 }
0x15fd   :  { %v3389_v18 = vmul.f32 %v4836_v31, %v3307_v33  ;;  %v4317_v33 = vld [vmem:[%s5531_s9 + $0x30] sm:$0xff] }
0x15fe   :  { %v4687_v20 = vpop.f32.mrf.mxu0 }
0x15ff   :  { %4695 = vmatprep.mubr.msk.f32.mxu0 %vm198_vm2, %v3389_v18 }
0x1600   :  { %4696 = vmatmul.mubr.msk.f32.vlgmr.msra.gmra.mxu0 %vm198_vm2, %v3390_v19 }
0x1601   :  { %4704 = vmatpush3.xpose.msk.msra.mxu0 %vm198_vm2, %v3555_v17  ;;  %4705 = vmatprep.mubr.msk.f32.mxu0 %vm4882_vm1, %v4881_v34  ;;  %v4315_v17 = vld [vmem:[%s5531_s9 + $0x20] sm:$0xff] }
0x1602   :  { %4713 = vmatprep.subr.mxu0 %v4881_v34 }
0x1604   :  { %4706 = vmatmul.mubr.msk.f32.vlgmr.msra.gmra.mxu0 %vm198_vm2, %v3553_v21 }
0x1605   :  { %4715 = vmatprep.mubr.msk.f32.mxu0 %vm4882_vm1, %v4881_v34 }
0x168f   :  { %v3548_v22 = vpop.f32.mrf.mxu1 }
0x1690   :  { %v3630_v23 = vsel %vm198_vm2, %v3548_v22, -inf }
0x1691   :  { %3631 = vmax.xlane.f32.xlu0 %v3630_v23  ;;  %v4702_v24 = vpop.f32.mrf.mxu1 }
0x16a7   :  { %3648 = vrot.lane.b32.xlu0 %v5286_v42, %s5540_s22 }
0x16c0   :  { %v4697_v26 = vpop.f32.mrf.mxu0 }
0x16c1   :  { %v3473_v28 = vadd.f32 %v4697_v26, %v3058_v25  ;;  %v4313_v25 = vld [vmem:[%s5529_s7 + $0x1] ss:$0 sm:$0xff] }
0x16c2   :  { %v3463_v29 = vpop.f32.mrf.mxu0 }
0x16c3   :  { %v3472_v30 = vadd.f32 %v3463_v29, %v3053_v27  ;;  %v4314_v27 = vld [vmem:[%s5530_s8 + $0x1] ss:$0 sm:$0xff] }
0x16c4   :  { %v3626_v32 = vpop.f32.mrf.mxu0 }
0x16c5   :  { %v3633_v34 = vsel %vm198_vm2, %v3626_v32, -inf }
0x16c6   :  { %3634 = vmax.xlane.f32.xlu1 %v3633_v34  ;;  %v4707_v38 = vpop.f32.mrf.mxu0 }
0x16d7   :  { %3724 = vrot.lane.b32.xlu1 %v5284_v40, %s5540_s22 }
0x171a   :  { %v3632_v39 = vpop.xlane.xlu0 %3631 }
0x171b   :  { %v3636_v42 = vsub.f32 %v3548_v22, %v3632_v39  ;;  %v4330_v39 = vld [vmem:[%s5533_s11 + $0x78] sm:$0xff] }
0x171d   :  { %v3638_v41 = vmul.f32 1.442695, %v3636_v42  ;;  %v4329_v42 = vld [vmem:[%s5533_s11 + $0x70] sm:$0xff] }
0x171e   :  { %v3649_v43 = vpop.permute.xlu0 %3648 }
0x171f   :  { %4839 = vpow2.f32 %v3638_v41  ;;  %4709 = vmatpush3.msra.mxu1 %v3649_v43  ;;  %v4328_v41 = vld [vmem:[%s5533_s11 + $0x68] sm:$0xff]  ;;  %v4327_v43 = vld [vmem:[%s5533_s11 + $0x60] sm:$0xff] }
0x1720   :  { %4718 = vmatprep.subr.mxu1 %v4276_v50 }
0x172c   :  { %v4840_v44 = vpop.eup %4839 }
0x172d   :  { %4711 = vmatmul.mubr.msk.f32.vlgmr.msra.gmra.mxu1 %vm198_vm2, %v4840_v44  ;;  %v3642_v45 = vsel %vm198_vm2, %v4840_v44, 0.0  ;;  %v4326_v44 = vld [vmem:[%s5533_s11 + $0x58] sm:$0xff] }
0x172e   :  { %3643 = vadd.xlane.f32.xlu0 %v3642_v45  ;;  %4719 = vmatpush3.msra.mxu1 %v4276_v50  ;;  %v4325_v45 = vld [vmem:[%s5533_s11 + $0x50] sm:$0xff] }
0x172f   :  { %4734 = vmatprep.subr.mxu1 %v4330_v39 }
0x174f   :  { %v3635_v46 = vpop.xlane.xlu1 %3634 }
0x1750   :  { %v3637_v47 = vsub.f32 %v3626_v32, %v3635_v46  ;;  %v4324_v46 = vld [vmem:[%s5533_s11 + $0x48] sm:$0xff] }
0x1752   :  { %v3640_v48 = vmul.f32 1.442695, %v3637_v47  ;;  %v4323_v47 = vld [vmem:[%s5533_s11 + $0x40] sm:$0xff] }
0x1753   :  { %v3725_v37 = vpop.permute.xlu1 %3724 }
0x1754   :  { %4841 = vpow2.f32 %v3640_v48  ;;  %4714 = vmatpush3.msra.mxu0 %v3725_v37  ;;  %v4320_v48 = vld [vmem:[%s5532_s10 + $0x1] ss:$0 sm:$0xff] }
0x1761   :  { %v4842_v49 = vpop.eup %4841 }
0x1762   :  { %4716 = vmatmul.mubr.msk.f32.vlgmr.msra.gmra.mxu0 %vm198_vm2, %v4842_v49  ;;  %v3645_v40 = vsel %vm198_vm2, %v4842_v49, 0.0 }
0x1763   :  { %3646 = vadd.xlane.f32.xlu1 %v3645_v40 }
0x17b7   :  { %v3644_v51 = vpop.xlane.xlu0 %3643 }
0x17b8   :  { %4843 = vrcp.f32 %v3644_v51 }
0x17c5   :  { %v4844_v52 = vpop.eup %4843 }
0x17ec   :  { %v3647_v56 = vpop.xlane.xlu1 %3646 }
0x17ed   :  { %v3720_v53 = vpop.f32.mrf.mxu1  ;;  %4845 = vrcp.f32 %v3647_v56 }
0x17ee   :  { %v3802_v54 = vmul.f32 %v4844_v52, %v3720_v53 }
0x17ef   :  { %v4712_v55 = vpop.f32.mrf.mxu1 }
0x17f0   :  { %4720 = vmatprep.mubr.msk.f32.mxu1 %vm198_vm2, %v3802_v54 }
0x17fa   :  { %v4846_v57 = vpop.eup %4845 }
0x1822   :  { %v3796_v58 = vpop.f32.mrf.mxu0 }
0x1823   :  { %v3803_v59 = vmul.f32 %v4846_v57, %v3796_v58 }
0x1824   :  { %v4717_v60 = vpop.f32.mrf.mxu0 }
0x1825   :  { %4721 = vmatmul.mubr.msk.f32.vlgmr.msra.gmra.mxu1 %vm198_vm2, %v3803_v59 }
0x1826   :  { %4735 = vmatpush3.msra.mxu1 %v4330_v39 }
0x1827   :  { %4736 = vmatprep.subr.mxu1 %v4329_v42 }
0x1828   :  { %4737 = vmatpush3.msra.mxu1 %v4329_v42 }
0x1829   :  { %4738 = vmatprep.subr.mxu1 %v4328_v41 }
0x182a   :  { %4739 = vmatpush3.msra.mxu1 %v4328_v41 }
0x182b   :  { %4740 = vmatprep.subr.mxu1 %v4327_v43 }
0x182c   :  { %4741 = vmatpush3.msra.mxu1 %v4327_v43 }
0x182d   :  { %4742 = vmatprep.subr.mxu1 %v4326_v44 }
0x182e   :  { %4743 = vmatpush3.msra.mxu1 %v4326_v44 }
0x182f   :  { %4744 = vmatprep.subr.mxu1 %v4325_v45 }
0x1830   :  { %4745 = vmatpush3.msra.mxu1 %v4325_v45 }
0x1831   :  { %4746 = vmatprep.subr.mxu1 %v4324_v46 }
0x1832   :  { %4747 = vmatpush3.msra.mxu1 %v4324_v46 }
0x1833   :  { %4748 = vmatprep.subr.mxu1 %v4323_v47 }
0x1834   :  { %4749 = vmatpush3.msra.mxu1 %v4323_v47 }
0x18e5   :  { %v4722_v61 = vpop.f32.mrf.mxu1 }
0x18e6   :  { %v3886_v62 = vadd.f32 %v4722_v61, %v3473_v28  ;;  %v4332_v61 = vld [vmem:[%s5534_s12 + $0x1] ss:$0 sm:$0xff] }
0x18e7   :  { %v3876_v0 = vpop.f32.mrf.mxu1 }
0x18e8   :  { %v3885_v1 = vadd.f32 %v3876_v0, %v3472_v30  ;;  %v3896_v2 = vadd.f32 %v4310_v63, %v3886_v62 }
0x18ea   :  { %v3895_v3 = vadd.f32 %v4310_v63, %v3885_v1  ;;  %v3898_v6 = vadd.f32 %v3896_v2, %v5273_v36  ;;  %v4318_v36 = vld [vmem:[%s5531_s9 + $0x38] sm:$0xff] }
0x18eb   :  { %4723 = vmatprep.subr.mxu0 %v4318_v36 }
0x18ec   :  { %v3897_v4 = vadd.f32 %v3895_v3, %v5271_v35  ;;  %v3906_v7 = vsel %vm55_vm0, %v3898_v6, 0.0  ;;  %4724 = vmatpush3.msra.mxu0 %v4318_v36 }
0x18ed   :  { %4725 = vmatprep.subr.mxu0 %v4317_v33 }
0x18ee   :  { %v3903_v5 = vsel %vm55_vm0, %v3897_v4, 0.0  ;;  %4726 = vmatpush3.msra.mxu0 %v4317_v33 }
0x18ef   :  { %3904 = vadd.xlane.f32.xlu0 %v3903_v5  ;;  %4727 = vmatprep.subr.mxu0 %v4316_v16 }
0x18f0   :  { %4728 = vmatpush3.msra.mxu0 %v4316_v16 }
0x18f1   :  { %4729 = vmatprep.subr.mxu0 %v4315_v17 }
0x18f2   :  { %4730 = vmatpush3.msra.mxu0 %v4315_v17 }
0x18f3   :  { %3907 = vadd.xlane.f32.xlu0 %v3906_v7 }
0x1978   :  { %v3905_v8 = vpop.xlane.xlu0 %3904 }
0x1979   :  { %v3909_v9 = vmul.f32 0.03125, %v3905_v8 }
0x197b   :  { %v3911_v10 = vsub.f32 %v3897_v4, %v3909_v9 }
0x197c   :  { %v3908_v11 = vpop.xlane.xlu0 %3907 }
0x197d   :  { %v3910_v12 = vmul.f32 0.03125, %v3908_v11  ;;  %v3913_v13 = vmul.f32 %v3911_v10, %v3911_v10 }
0x197f   :  { %v3912_v14 = vsub.f32 %v3898_v6, %v3910_v12  ;;  %v3915_v15 = vsel %vm55_vm0, %v3913_v13, 0.0 }
0x1980   :  { %3916 = vadd.xlane.f32.xlu0 %v3915_v15 }
0x1981   :  { %v3914_v31 = vmul.f32 %v3912_v14, %v3912_v14 }
0x1983   :  { %v3918_v35 = vsel %vm55_vm0, %v3914_v31, 0.0 }
0x1984   :  { %3919 = vadd.xlane.f32.xlu1 %v3918_v35 }
0x1a09   :  { %v3917_v18 = vpop.xlane.xlu0 %3916 }
0x1a0a   :  { %v3921_v19 = vmul.f32 0.03125, %v3917_v18 }
0x1a0c   :  { %v3923_v20 = vadd.f32 1e-12, %v3921_v19  ;;  %v4337_v19 = vld [vmem:[%s5535_s13 + $0x1] ss:$0 sm:$0xff]  ;;  %s4859_s13 = scalar_lea.vmem %s4210_s2, 32 }
0x1a0d   :  { %v3920_v21 = vpop.xlane.xlu1 %3919  ;;  %p4860_p0 = scmp.ne.s32.totalorder %s4210_s2, %s4859_s13  ;;  %p4865_p2 = scmp.lt.s32.totalorder %s4859_s13, %s4859_s13 }
0x1a0e   :  { %4847 = vrsqrt.f32 %v3923_v20  ;;  %v3922_v22 = vmul.f32 0.03125, %v3920_v21 }
0x1a0f   :  { %p4866_p3 = por %p4865_p2, %p4864_p1 }
0x1a10   :  { %v3924_v23 = vadd.f32 1e-12, %v3922_v22  ;;  %v4338_v22 = vld [vmem:[%s5536_s14 + $0x1] ss:$0 sm:$0xff] }
0x1a11   :  { %p4867_p4 = pnand %p4866_p3, %p4860_p0 }
0x1a12   :  { %4849 = vrsqrt.f32 %v3924_v23 }
0x1a1b   :  { %v4848_v24 = vpop.eup %4847 }
0x1a1c   :  { %v3927_v26 = vmul.f32 %v4848_v24, %v3911_v10 }
0x1a1e   :  { %v3935_v28 = vmul.f32 %v4313_v25, %v3927_v26 }
0x1a1f   :  { %v4850_v29 = vpop.eup %4849 }
0x1a20   :  { %v3928_v30 = vmul.f32 %v4850_v29, %v3912_v14  ;;  %v3943_v32 = vadd.f32 %v4314_v27, %v3935_v28 }
0x1a22   :  { %v3936_v34 = vmul.f32 %v4313_v25, %v3928_v30  ;;  %4731 = vmatprep.mubr.msk.f32.mxu0 %vm55_vm0, %v3943_v32 }
0x1a24   :  { %v3944_v38 = vadd.f32 %v4314_v27, %v3936_v34 }
0x1a26   :  { %4732 = vmatmul.mubr.msk.f32.vlgmr.msra.gmra.mxu0 %vm55_vm0, %v3944_v38 }
0x1ae6   :  { %v4733_v37 = vpop.f32.mrf.mxu0 }
0x1ae7   :  { %v4036_v49 = vadd.f32 %v4733_v37, %v4320_v48 }
0x1ae8   :  { %v4030_v40 = vpop.f32.mrf.mxu0 }
0x1ae9   :  { %v4042_v50 = vmul.f32 0.70710677, %v4036_v49  ;;  %v4031_v51 = vadd.f32 %v4320_v48, %v4030_v40  ;;  %v4040_v58 = vmul.f32 0.5, %v4036_v49 }
0x1aeb   :  { %4851 = verf.f32 %v4042_v50  ;;  %v4041_v52 = vmul.f32 0.70710677, %v4031_v51  ;;  %v4039_v56 = vmul.f32 0.5, %v4031_v51 }
0x1aed   :  { %4853 = verf.f32 %v4041_v52 }
0x1af8   :  { %v4852_v53 = vpop.eup %4851 }
0x1af9   :  { %v4046_v55 = vadd.f32 1.0, %v4852_v53 }
0x1afa   :  { %v4854_v54 = vpop.eup %4853 }
0x1afb   :  { %v4045_v57 = vadd.f32 1.0, %v4854_v54  ;;  %v4048_v60 = vmul.f32 %v4046_v55, %v4040_v58 }
0x1afd   :  { %v4047_v59 = vmul.f32 %v4045_v57, %v4039_v56 }
0x1aff   :  { %4750 = vmatprep.mubr.msk.f32.mxu1 %vm2014_vm3, %v4047_v59 }
0x1b00   :  { %4751 = vmatmul.mubr.msk.f32.vlgmr.msra.gmra.mxu1 %vm2014_vm3, %v4048_v60 }
0x1bc0   :  { %v4752_v62 = vpop.f32.mrf.mxu1 }
0x1bc1   :  { %v4144_v63 = vadd.f32 %v4752_v62, %v4332_v61 }
0x1bc2   :  { %v4138_v0 = vpop.f32.mrf.mxu1 }
0x1bc3   :  { %v4139_v1 = vadd.f32 %v4332_v61, %v4138_v0  ;;  %v4148_v2 = vadd.f32 %v4144_v63, %v3944_v38 }
0x1bc5   :  { %v4156_v3 = vsel %vm55_vm0, %v4148_v2, 0.0  ;;  %v4147_v4 = vadd.f32 %v4139_v1, %v3943_v32 }
0x1bc6   :  { %4157 = vadd.xlane.f32.xlu0 %v4156_v3 }
0x1bc7   :  { %v4153_v5 = vsel %vm55_vm0, %v4147_v4, 0.0 }
0x1bc8   :  { %4154 = vadd.xlane.f32.xlu1 %v4153_v5 }
0x1c4f   :  { %v4158_v6 = vpop.xlane.xlu0 %4157 }
0x1c50   :  { %v4160_v7 = vmul.f32 0.03125, %v4158_v6 }
0x1c51   :  { %v4155_v8 = vpop.xlane.xlu1 %4154 }
0x1c52   :  { %v4162_v9 = vsub.f32 %v4148_v2, %v4160_v7  ;;  %v4159_v10 = vmul.f32 0.03125, %v4155_v8 }
0x1c54   :  { %v4161_v11 = vsub.f32 %v4147_v4, %v4159_v10  ;;  %v4164_v12 = vmul.f32 %v4162_v9, %v4162_v9 }
0x1c56   :  { %v4168_v13 = vsel %vm55_vm0, %v4164_v12, 0.0  ;;  %v4163_v14 = vmul.f32 %v4161_v11, %v4161_v11 }
0x1c57   :  { %4169 = vadd.xlane.f32.xlu0 %v4168_v13 }
0x1c58   :  { %v4165_v15 = vsel %vm55_vm0, %v4163_v14, 0.0 }
0x1c59   :  { %4166 = vadd.xlane.f32.xlu1 %v4165_v15 }
0x1ce0   :  { %v4170_v31 = vpop.xlane.xlu0 %4169 }
0x1ce1   :  { %v4172_v35 = vmul.f32 0.03125, %v4170_v31 }
0x1ce2   :  { %v4167_v36 = vpop.xlane.xlu1 %4166 }
0x1ce3   :  { %v4174_v33 = vadd.f32 1e-12, %v4172_v35  ;;  %v4171_v16 = vmul.f32 0.03125, %v4167_v36 }
0x1ce5   :  { %4855 = vrsqrt.f32 %v4174_v33  ;;  %v4173_v17 = vadd.f32 1e-12, %v4171_v16 }
0x1ce7   :  { %4857 = vrsqrt.f32 %v4173_v17 }
0x1cf2   :  { %v4856_v18 = vpop.eup %4855 }
0x1cf3   :  { %v4178_v20 = vmul.f32 %v4856_v18, %v4162_v9 }
0x1cf4   :  { %v4858_v21 = vpop.eup %4857 }
0x1cf5   :  { %v4177_v23 = vmul.f32 %v4858_v21, %v4161_v11  ;;  %v4186_v24 = vmul.f32 %v4337_v19, %v4178_v20 }
0x1cf7   :  { %v4185_v25 = vmul.f32 %v4337_v19, %v4177_v23  ;;  %v4194_v26 = vadd.f32 %v4338_v22, %v4186_v24 }
0x1cf9   :  { %v4193_v27 = vadd.f32 %v4338_v22, %v4185_v25  ;;  %v4197_v28 = vrot.slane %v4194_v26, 7 }
0x1cfb   :  { %v4199_v29 = vsel %vm4198_vm4, %v4197_v28, %v4193_v27 }
0x1cfc   :  { %4202 = vst.msk [vmem:[#allocation2] sm:$0x3] %vm4201_vm5, %v4199_v29 }
0x1cfd   :  { %4870 = shalt.err (!%p4867_p4)
}
0x1cfe   :  { %4212 = dma.vmem_to_hbm [thread:$0]  %s4210_s2, 32, %s5537_s15, [#allocation3]  }
0x1cff   :  { %4879 = dma.done.wait [#allocation3], 32  }
0x1d00   :  { %4880 = vsyncadd [#allocation3], 4294967264 }
0x1d01   :  { %4216 = vsyncpa [#allocation3], 1 }

</bundles_post_ra>
